<compile_context>
chip_gen: v7x
topology: tpu7x:2x2x1
jax: 0.10.0
libtpu: 0.0.40
codegen_flags: <defaults>
</compile_context>

<pallas_src>
import functools

import jax
import jax.numpy as jnp
from jax.experimental import pallas as pl
from jax.experimental.pallas import tpu as pltpu

VTH = 0.3
TAU = 0.3
STEP = 20
D_IN = 30
D_OUT = 2

LANE = 128               # TPU lane width; batch tiles are multiples of this
MAX_BATCH_TILE = 2048    # lane-dense batch tile per grid step (mult. of 128)
LANE_CHUNK = 512         # compute chunk inside a tile (keeps live vregs small)
VMEM_LIMIT_BYTES = 48 * 1024 * 1024


def _round_up(x, m):
    return ((x + m - 1) // m) * m


def _make_kernel(return_sequences):
    def kernel(x_ref, w_ref, avg_ref, *seq_refs):
        """One batch tile.

        x_ref:   (T, D_IN, tb)     inputs, time-major, batch on lanes
        w_ref:   (D_OUT, D_IN)     fc3 weight
        avg_ref: (D_OUT, tb)       spike_sum / T
        seq_refs (if return_sequences):
          u_ref: (T*D_OUT, tb)     membrane potential, rows [2t, 2t+1] = step t
          o_ref: (T*D_OUT, tb)     spikes, same layout
        """
        T = x_ref.shape[0]
        tb = x_ref.shape[2]
        # Big DMA tile, small compute chunk: the (2, chunk) u/o/s live set
        # stays well inside 64 vregs even at tb = 2048-4096.
        chunk = LANE_CHUNK if (tb > LANE_CHUNK and tb % LANE_CHUNK == 0) else tb

        w = w_ref[...]                       # tiny (2, 30) weight, hoisted once
        inv_T = 1.0 / T

        for c in range(tb // chunk):         # static unroll over lane chunks
            c0, c1 = c * chunk, (c + 1) * chunk
            u = jnp.zeros((D_OUT, chunk), jnp.float32)
            o = jnp.zeros((D_OUT, chunk), jnp.float32)
            s = jnp.zeros((D_OUT, chunk), jnp.float32)
            for t in range(T):               # static unroll (T compile-time)
                # Inline projection: the 20 independent 2x30 dots are
                # overlapped with the VPU recurrence by the LLO scheduler.
                p = jnp.dot(w, x_ref[t, :, c0:c1],
                            preferred_element_type=jnp.float32)
                u = TAU * u * (1.0 - o) + p
                o = (u - VTH > 0.0).astype(jnp.float32)   # SpikeAct.forward
                s = s + o
                if return_sequences:
                    u_ref, o_ref = seq_refs
                    u_ref[D_OUT * t:D_OUT * (t + 1), c0:c1] = u
                    o_ref[D_OUT * t:D_OUT * (t + 1), c0:c1] = o
            avg_ref[:, c0:c1] = s * inv_T

    return kernel


def _spike_nn_pallas(x_tdb, w, tb, n_tiles, return_sequences):
    T, d_in, b_pad = x_tdb.shape

    out_shape = [jax.ShapeDtypeStruct((D_OUT, b_pad), jnp.float32)]
    out_specs = [pl.BlockSpec((D_OUT, tb), lambda b: (0, b))]
    if return_sequences:
        out_shape += [jax.ShapeDtypeStruct((T * D_OUT, b_pad), jnp.float32)] * 2
        out_specs += [pl.BlockSpec((T * D_OUT, tb), lambda b: (0, b))] * 2

    return pl.pallas_call(
        _make_kernel(return_sequences),
        out_shape=tuple(out_shape),
        grid_spec=pltpu.PrefetchScalarGridSpec(
            num_scalar_prefetch=0,
            grid=(n_tiles,),
            in_specs=[
                pl.BlockSpec((T, d_in, tb), lambda b: (0, 0, b)),
                pl.BlockSpec((D_OUT, d_in), lambda b: (0, 0)),
            ],
            out_specs=tuple(out_specs),
        ),
        compiler_params=pltpu.CompilerParams(
            dimension_semantics=("parallel",),        # shards tiles on v7x TCs
            vmem_limit_bytes=VMEM_LIMIT_BYTES,
        ),
    )(x_tdb, w)


def spike_nn_forward_timemajor(x_tdb, w, *, return_sequences=True):
    """Lane-dense primary API (no relayout copies).

    x_tdb: (T, D_IN, B) float32 -- time-major, batch on the last (lane) axis.
    w:     (D_OUT, D_IN) float32 -- fc3 weight.
    Returns:
      avg:   (D_OUT, B)                  == spike_sum / step
      u_all: (T, D_OUT, B)   [only if return_sequences]
      o_all: (T, D_OUT, B)   [only if return_sequences]
    """
    T, d_in, B = x_tdb.shape
    assert T == STEP and d_in == D_IN
    x_tdb = x_tdb.astype(jnp.float32)
    w = w.astype(jnp.float32)

    # Batch tiling: pad lanes to a multiple of 128 (unmasked vld/vst); for
    # larger B force >= 2 grid steps so both v7x TensorCores get work, and
    # cap the per-step tile at MAX_BATCH_TILE.
    if B <= LANE:
        n_tiles = 1
        tb = _round_up(B, LANE)
    else:
        n_tiles = max(2, _round_up(B, MAX_BATCH_TILE) // MAX_BATCH_TILE)
        tb = _round_up(-(-B // n_tiles), LANE)
    b_pad = n_tiles * tb
    if b_pad != B:
        x_tdb = jnp.pad(x_tdb, ((0, 0), (0, 0), (0, b_pad - B)))

    outs = _spike_nn_pallas(x_tdb, w, tb, n_tiles, return_sequences)
    avg = outs[0][:, :B]
    if not return_sequences:
        return avg
    u_all = outs[1][:, :B].reshape(T, D_OUT, B)   # free reshape of (40, B)
    o_all = outs[2][:, :B].reshape(T, D_OUT, B)
    return avg, u_all, o_all


def spike_nn_forward(x, w, *, return_sequences=True):
    """PyTorch-layout compatibility wrapper.

    x: (B, D_IN, T) float32 (the module's `input`), w: (D_OUT, D_IN).
    Returns avg (B, D_OUT) and, if requested, u_all / o_all as (T, B, D_OUT)
    stacked arrays (instead of Python lists of (B, D_OUT)).

    NOTE: this wrapper re-lays-out x and the sequence outputs (extra HBM
    copies).  On this memory-bound op, feed (T, D_IN, B) directly via
    spike_nn_forward_timemajor in production to avoid ~2-3x extra traffic.
    """
    B, d_in, T = x.shape
    x_tdb = jnp.transpose(x, (2, 1, 0))
    out = spike_nn_forward_timemajor(x_tdb, w, return_sequences=return_sequences)
    if not return_sequences:
        return out.T
    avg, u_all, o_all = out
    return (jnp.transpose(avg, (1, 0)),
            jnp.transpose(u_all, (0, 2, 1)),
            jnp.transpose(o_all, (0, 2, 1)))


def spike_nn_reference(x, w):
    """Pure-JAX reference matching the PyTorch forward."""
    B = x.shape[0]
    u = jnp.zeros((B, D_OUT), jnp.float32)
    o = jnp.zeros((B, D_OUT), jnp.float32)
    s = jnp.zeros((B, D_OUT), jnp.float32)
    u_list, o_list = [], []
    for t in range(STEP):
        u = TAU * u * (1.0 - o) + x[:, :, t] @ w.T
        o = (u - VTH > 0.0).astype(jnp.float32)
        s = s + o
        u_list.append(u)
        o_list.append(o)
    return s / STEP, jnp.stack(u_list), jnp.stack(o_list)


if __name__ == "__main__":
    key = jax.random.PRNGKey(0)
    k_x, k_w = jax.random.split(key)

    B = 2
    # Input: (batch, 30, step) as implied by input[:, :, t] with Linear(30, 2).
    x = jax.random.normal(k_x, (B, D_IN, STEP), dtype=jnp.float32)
    # Deterministic Linear(30, 2, bias=None) weight init (torch-style uniform).
    bound = 1.0 / jnp.sqrt(float(D_IN))
    w = jax.random.uniform(k_w, (D_OUT, D_IN), dtype=jnp.float32,
                           minval=-bound, maxval=bound)

    fwd = jax.jit(functools.partial(spike_nn_forward, return_sequences=True))
    avg, u_all, o_all = fwd(x, w)
    jax.block_until_ready((avg, u_all, o_all))

    # Inference-only mode: only spike_sum / step, no per-step HBM writes.
    fwd_avg = jax.jit(functools.partial(spike_nn_forward, return_sequences=False))
    avg_only = fwd_avg(x, w)
    jax.block_until_ready(avg_only)

    avg_ref, u_ref_all, o_ref_all = spike_nn_reference(x, w)

    # avg is checked with a tight tolerance; the hard threshold (u - Vth > 0)
    # can in principle flip on ulp-level accumulation differences, so the
    # per-step traces are checked via agreement rate rather than strict
    # elementwise equality.
    assert jnp.allclose(avg, avg_ref, atol=1e-5), "spike_sum mismatch"
    assert jnp.allclose(avg_only, avg_ref, atol=1e-5), "inference-mode mismatch"
    o_agree = jnp.mean((o_all == o_ref_all).astype(jnp.float32))
    u_agree = jnp.mean((jnp.abs(u_all - u_ref_all) < 1e-4).astype(jnp.float32))
    assert o_agree >= 0.98, f"spike agreement too low: {o_agree}"
    assert u_agree >= 0.98, f"membrane-potential agreement too low: {u_agree}"

    print("KERNEL_OK")
</pallas_src>

<mosaic_0001>
module attributes {stable_mosaic.version = 11 : i64} {
  func.func @kernel(%arg0: i32, %arg1: memref<20x30x128xf32, #tpu.memory_space<vmem>>, %arg2: memref<2x30xf32, #tpu.memory_space<vmem>>, %arg3: memref<2x128xf32, #tpu.memory_space<vmem>>, %arg4: memref<40x128xf32, #tpu.memory_space<vmem>>, %arg5: memref<40x128xf32, #tpu.memory_space<vmem>>) attributes {dimension_semantics = [#tpu.dimension_semantics<parallel>], iteration_bounds = array<i64: 1>, scalar_prefetch = 0 : i64, scratch_operands = 0 : i64, tpu.core_type = #tpu.core_type<tc>, window_params = [{transform_indices = @transform_0, window_bounds = array<i64: 20, 30, 128>}, {pipeline_mode = #tpu.pipeline_mode<synchronous>, transform_indices = @transform_1, window_bounds = array<i64: 2, 30>}, {transform_indices = @transform_2, window_bounds = array<i64: 2, 128>}, {transform_indices = @transform_3, window_bounds = array<i64: 40, 128>}, {transform_indices = @transform_4, window_bounds = array<i64: 40, 128>}]} {
    %c0 = arith.constant 0 : index
    %c0_0 = arith.constant 0 : index
    %0 = vector.load %arg2[%c0, %c0_0] : memref<2x30xf32, #tpu.memory_space<vmem>>, vector<2x30xf32>
    %cst = arith.constant 0.000000e+00 : f32
    %1 = vector.broadcast %cst : f32 to vector<2x128xf32>
    %cst_1 = arith.constant 0.000000e+00 : f32
    %2 = vector.broadcast %cst_1 : f32 to vector<2x128xf32>
    %cst_2 = arith.constant 0.000000e+00 : f32
    %3 = vector.broadcast %cst_2 : f32 to vector<2x128xf32>
    %c0_3 = arith.constant 0 : index
    %c0_4 = arith.constant 0 : index
    %c0_5 = arith.constant 0 : index
    %4 = vector.load %arg1[%c0_3, %c0_4, %c0_5] : memref<20x30x128xf32, #tpu.memory_space<vmem>>, vector<1x30x128xf32>
    %5 = vector.shape_cast %4 : vector<1x30x128xf32> to vector<30x128xf32>
    %cst_6 = arith.constant dense<0.000000e+00> : vector<2x128xf32>
    %6 = tpu.matmul %0, %5, %cst_6 {dimension_numbers = #tpu.dot_dimension_numbers<[1], [0], [0], [1], [0, 0, 1, 1], [], []>} : vector<2x30xf32>, vector<30x128xf32>, vector<2x128xf32> -> vector<2x128xf32>
    %cst_7 = arith.constant 3.000000e-01 : f32
    %7 = vector.broadcast %cst_7 : f32 to vector<2x128xf32>
    %8 = arith.mulf %7, %1 : vector<2x128xf32>
    %cst_8 = arith.constant 1.000000e+00 : f32
    %9 = vector.broadcast %cst_8 : f32 to vector<2x128xf32>
    %10 = arith.subf %9, %2 : vector<2x128xf32>
    %11 = arith.mulf %8, %10 : vector<2x128xf32>
    %12 = arith.addf %11, %6 : vector<2x128xf32>
    %cst_9 = arith.constant 3.000000e-01 : f32
    %13 = vector.broadcast %cst_9 : f32 to vector<2x128xf32>
    %14 = arith.subf %12, %13 : vector<2x128xf32>
    %cst_10 = arith.constant 0.000000e+00 : f32
    %15 = vector.broadcast %cst_10 : f32 to vector<2x128xf32>
    %16 = arith.cmpf ogt, %14, %15 : vector<2x128xf32>
    %17 = arith.extui %16 : vector<2x128xi1> to vector<2x128xi32>
    %18 = arith.sitofp %17 : vector<2x128xi32> to vector<2x128xf32>
    %19 = arith.addf %3, %18 : vector<2x128xf32>
    %c0_11 = arith.constant 0 : index
    %c0_12 = arith.constant 0 : index
    %20 = vector.load %arg4[%c0_11, %c0_12] : memref<40x128xf32, #tpu.memory_space<vmem>>, vector<2x128xf32>
    tpu.vector_store %arg4[%c0_11, %c0_12], %12 {strides = array<i32>} : memref<40x128xf32, #tpu.memory_space<vmem>>, vector<2x128xf32>,
    %c0_13 = arith.constant 0 : index
    %c0_14 = arith.constant 0 : index
    %21 = vector.load %arg5[%c0_13, %c0_14] : memref<40x128xf32, #tpu.memory_space<vmem>>, vector<2x128xf32>
    tpu.vector_store %arg5[%c0_13, %c0_14], %18 {strides = array<i32>} : memref<40x128xf32, #tpu.memory_space<vmem>>, vector<2x128xf32>,
    %c1 = arith.constant 1 : index
    %c0_15 = arith.constant 0 : index
    %c0_16 = arith.constant 0 : index
    %22 = vector.load %arg1[%c1, %c0_15, %c0_16] : memref<20x30x128xf32, #tpu.memory_space<vmem>>, vector<1x30x128xf32>
    %23 = vector.shape_cast %22 : vector<1x30x128xf32> to vector<30x128xf32>
    %cst_17 = arith.constant dense<0.000000e+00> : vector<2x128xf32>
    %24 = tpu.matmul %0, %23, %cst_17 {dimension_numbers = #tpu.dot_dimension_numbers<[1], [0], [0], [1], [0, 0, 1, 1], [], []>} : vector<2x30xf32>, vector<30x128xf32>, vector<2x128xf32> -> vector<2x128xf32>
    %cst_18 = arith.constant 3.000000e-01 : f32
    %25 = vector.broadcast %cst_18 : f32 to vector<2x128xf32>
    %26 = arith.mulf %25, %12 : vector<2x128xf32>
    %cst_19 = arith.constant 1.000000e+00 : f32
    %27 = vector.broadcast %cst_19 : f32 to vector<2x128xf32>
    %28 = arith.subf %27, %18 : vector<2x128xf32>
    %29 = arith.mulf %26, %28 : vector<2x128xf32>
    %30 = arith.addf %29, %24 : vector<2x128xf32>
    %cst_20 = arith.constant 3.000000e-01 : f32
    %31 = vector.broadcast %cst_20 : f32 to vector<2x128xf32>
    %32 = arith.subf %30, %31 : vector<2x128xf32>
    %cst_21 = arith.constant 0.000000e+00 : f32
    %33 = vector.broadcast %cst_21 : f32 to vector<2x128xf32>
    %34 = arith.cmpf ogt, %32, %33 : vector<2x128xf32>
    %35 = arith.extui %34 : vector<2x128xi1> to vector<2x128xi32>
    %36 = arith.sitofp %35 : vector<2x128xi32> to vector<2x128xf32>
    %37 = arith.addf %19, %36 : vector<2x128xf32>
    %c2 = arith.constant 2 : index
    %c0_22 = arith.constant 0 : index
    %38 = vector.load %arg4[%c2, %c0_22] : memref<40x128xf32, #tpu.memory_space<vmem>>, vector<2x128xf32>
    tpu.vector_store %arg4[%c2, %c0_22], %30 {strides = array<i32>} : memref<40x128xf32, #tpu.memory_space<vmem>>, vector<2x128xf32>,
    %c2_23 = arith.constant 2 : index
    %c0_24 = arith.constant 0 : index
    %39 = vector.load %arg5[%c2_23, %c0_24] : memref<40x128xf32, #tpu.memory_space<vmem>>, vector<2x128xf32>
    tpu.vector_store %arg5[%c2_23, %c0_24], %36 {strides = array<i32>} : memref<40x128xf32, #tpu.memory_space<vmem>>, vector<2x128xf32>,
    %c2_25 = arith.constant 2 : index
    %c0_26 = arith.constant 0 : index
    %c0_27 = arith.constant 0 : index
    %40 = vector.load %arg1[%c2_25, %c0_26, %c0_27] : memref<20x30x128xf32, #tpu.memory_space<vmem>>, vector<1x30x128xf32>
    %41 = vector.shape_cast %40 : vector<1x30x128xf32> to vector<30x128xf32>
    %cst_28 = arith.constant dense<0.000000e+00> : vector<2x128xf32>
    %42 = tpu.matmul %0, %41, %cst_28 {dimension_numbers = #tpu.dot_dimension_numbers<[1], [0], [0], [1], [0, 0, 1, 1], [], []>} : vector<2x30xf32>, vector<30x128xf32>, vector<2x128xf32> -> vector<2x128xf32>
    %cst_29 = arith.constant 3.000000e-01 : f32
    %43 = vector.broadcast %cst_29 : f32 to vector<2x128xf32>
    %44 = arith.mulf %43, %30 : vector<2x128xf32>
    %cst_30 = arith.constant 1.000000e+00 : f32
    %45 = vector.broadcast %cst_30 : f32 to vector<2x128xf32>
    %46 = arith.subf %45, %36 : vector<2x128xf32>
    %47 = arith.mulf %44, %46 : vector<2x128xf32>
    %48 = arith.addf %47, %42 : vector<2x128xf32>
    %cst_31 = arith.constant 3.000000e-01 : f32
    %49 = vector.broadcast %cst_31 : f32 to vector<2x128xf32>
    %50 = arith.subf %48, %49 : vector<2x128xf32>
    %cst_32 = arith.constant 0.000000e+00 : f32
    %51 = vector.broadcast %cst_32 : f32 to vector<2x128xf32>
    %52 = arith.cmpf ogt, %50, %51 : vector<2x128xf32>
    %53 = arith.extui %52 : vector<2x128xi1> to vector<2x128xi32>
    %54 = arith.sitofp %53 : vector<2x128xi32> to vector<2x128xf32>
    %55 = arith.addf %37, %54 : vector<2x128xf32>
    %c4 = arith.constant 4 : index
    %c0_33 = arith.constant 0 : index
    %56 = vector.load %arg4[%c4, %c0_33] : memref<40x128xf32, #tpu.memory_space<vmem>>, vector<2x128xf32>
    tpu.vector_store %arg4[%c4, %c0_33], %48 {strides = array<i32>} : memref<40x128xf32, #tpu.memory_space<vmem>>, vector<2x128xf32>,
    %c4_34 = arith.constant 4 : index
    %c0_35 = arith.constant 0 : index
    %57 = vector.load %arg5[%c4_34, %c0_35] : memref<40x128xf32, #tpu.memory_space<vmem>>, vector<2x128xf32>
    tpu.vector_store %arg5[%c4_34, %c0_35], %54 {strides = array<i32>} : memref<40x128xf32, #tpu.memory_space<vmem>>, vector<2x128xf32>,
    %c3 = arith.constant 3 : index
    %c0_36 = arith.constant 0 : index
    %c0_37 = arith.constant 0 : index
    %58 = vector.load %arg1[%c3, %c0_36, %c0_37] : memref<20x30x128xf32, #tpu.memory_space<vmem>>, vector<1x30x128xf32>
    %59 = vector.shape_cast %58 : vector<1x30x128xf32> to vector<30x128xf32>
    %cst_38 = arith.constant dense<0.000000e+00> : vector<2x128xf32>
    %60 = tpu.matmul %0, %59, %cst_38 {dimension_numbers = #tpu.dot_dimension_numbers<[1], [0], [0], [1], [0, 0, 1, 1], [], []>} : vector<2x30xf32>, vector<30x128xf32>, vector<2x128xf32> -> vector<2x128xf32>
    %cst_39 = arith.constant 3.000000e-01 : f32
    %61 = vector.broadcast %cst_39 : f32 to vector<2x128xf32>
    %62 = arith.mulf %61, %48 : vector<2x128xf32>
    %cst_40 = arith.constant 1.000000e+00 : f32
    %63 = vector.broadcast %cst_40 : f32 to vector<2x128xf32>
    %64 = arith.subf %63, %54 : vector<2x128xf32>
    %65 = arith.mulf %62, %64 : vector<2x128xf32>
    %66 = arith.addf %65, %60 : vector<2x128xf32>
    %cst_41 = arith.constant 3.000000e-01 : f32
    %67 = vector.broadcast %cst_41 : f32 to vector<2x128xf32>
    %68 = arith.subf %66, %67 : vector<2x128xf32>
    %cst_42 = arith.constant 0.000000e+00 : f32
    %69 = vector.broadcast %cst_42 : f32 to vector<2x128xf32>
    %70 = arith.cmpf ogt, %68, %69 : vector<2x128xf32>
    %71 = arith.extui %70 : vector<2x128xi1> to vector<2x128xi32>
    %72 = arith.sitofp %71 : vector<2x128xi32> to vector<2x128xf32>
    %73 = arith.addf %55, %72 : vector<2x128xf32>
    %c6 = arith.constant 6 : index
    %c0_43 = arith.constant 0 : index
    %74 = vector.load %arg4[%c6, %c0_43] : memref<40x128xf32, #tpu.memory_space<vmem>>, vector<2x128xf32>
    tpu.vector_store %arg4[%c6, %c0_43], %66 {strides = array<i32>} : memref<40x128xf32, #tpu.memory_space<vmem>>, vector<2x128xf32>,
    %c6_44 = arith.constant 6 : index
    %c0_45 = arith.constant 0 : index
    %75 = vector.load %arg5[%c6_44, %c0_45] : memref<40x128xf32, #tpu.memory_space<vmem>>, vector<2x128xf32>
    tpu.vector_store %arg5[%c6_44, %c0_45], %72 {strides = array<i32>} : memref<40x128xf32, #tpu.memory_space<vmem>>, vector<2x128xf32>,
    %c4_46 = arith.constant 4 : index
    %c0_47 = arith.constant 0 : index
    %c0_48 = arith.constant 0 : index
    %76 = vector.load %arg1[%c4_46, %c0_47, %c0_48] : memref<20x30x128xf32, #tpu.memory_space<vmem>>, vector<1x30x128xf32>
    %77 = vector.shape_cast %76 : vector<1x30x128xf32> to vector<30x128xf32>
    %cst_49 = arith.constant dense<0.000000e+00> : vector<2x128xf32>
    %78 = tpu.matmul %0, %77, %cst_49 {dimension_numbers = #tpu.dot_dimension_numbers<[1], [0], [0], [1], [0, 0, 1, 1], [], []>} : vector<2x30xf32>, vector<30x128xf32>, vector<2x128xf32> -> vector<2x128xf32>
    %cst_50 = arith.constant 3.000000e-01 : f32
    %79 = vector.broadcast %cst_50 : f32 to vector<2x128xf32>
    %80 = arith.mulf %79, %66 : vector<2x128xf32>
    %cst_51 = arith.constant 1.000000e+00 : f32
    %81 = vector.broadcast %cst_51 : f32 to vector<2x128xf32>
    %82 = arith.subf %81, %72 : vector<2x128xf32>
    %83 = arith.mulf %80, %82 : vector<2x128xf32>
    %84 = arith.addf %83, %78 : vector<2x128xf32>
    %cst_52 = arith.constant 3.000000e-01 : f32
    %85 = vector.broadcast %cst_52 : f32 to vector<2x128xf32>
    %86 = arith.subf %84, %85 : vector<2x128xf32>
    %cst_53 = arith.constant 0.000000e+00 : f32
    %87 = vector.broadcast %cst_53 : f32 to vector<2x128xf32>
    %88 = arith.cmpf ogt, %86, %87 : vector<2x128xf32>
    %89 = arith.extui %88 : vector<2x128xi1> to vector<2x128xi32>
    %90 = arith.sitofp %89 : vector<2x128xi32> to vector<2x128xf32>
    %91 = arith.addf %73, %90 : vector<2x128xf32>
    %c8 = arith.constant 8 : index
    %c0_54 = arith.constant 0 : index
    %92 = vector.load %arg4[%c8, %c0_54] : memref<40x128xf32, #tpu.memory_space<vmem>>, vector<2x128xf32>
    tpu.vector_store %arg4[%c8, %c0_54], %84 {strides = array<i32>} : memref<40x128xf32, #tpu.memory_space<vmem>>, vector<2x128xf32>,
    %c8_55 = arith.constant 8 : index
    %c0_56 = arith.constant 0 : index
    %93 = vector.load %arg5[%c8_55, %c0_56] : memref<40x128xf32, #tpu.memory_space<vmem>>, vector<2x128xf32>
    tpu.vector_store %arg5[%c8_55, %c0_56], %90 {strides = array<i32>} : memref<40x128xf32, #tpu.memory_space<vmem>>, vector<2x128xf32>,
    %c5 = arith.constant 5 : index
    %c0_57 = arith.constant 0 : index
    %c0_58 = arith.constant 0 : index
    %94 = vector.load %arg1[%c5, %c0_57, %c0_58] : memref<20x30x128xf32, #tpu.memory_space<vmem>>, vector<1x30x128xf32>
    %95 = vector.shape_cast %94 : vector<1x30x128xf32> to vector<30x128xf32>
    %cst_59 = arith.constant dense<0.000000e+00> : vector<2x128xf32>
    %96 = tpu.matmul %0, %95, %cst_59 {dimension_numbers = #tpu.dot_dimension_numbers<[1], [0], [0], [1], [0, 0, 1, 1], [], []>} : vector<2x30xf32>, vector<30x128xf32>, vector<2x128xf32> -> vector<2x128xf32>
    %cst_60 = arith.constant 3.000000e-01 : f32
    %97 = vector.broadcast %cst_60 : f32 to vector<2x128xf32>
    %98 = arith.mulf %97, %84 : vector<2x128xf32>
    %cst_61 = arith.constant 1.000000e+00 : f32
    %99 = vector.broadcast %cst_61 : f32 to vector<2x128xf32>
    %100 = arith.subf %99, %90 : vector<2x128xf32>
    %101 = arith.mulf %98, %100 : vector<2x128xf32>
    %102 = arith.addf %101, %96 : vector<2x128xf32>
    %cst_62 = arith.constant 3.000000e-01 : f32
    %103 = vector.broadcast %cst_62 : f32 to vector<2x128xf32>
    %104 = arith.subf %102, %103 : vector<2x128xf32>
    %cst_63 = arith.constant 0.000000e+00 : f32
    %105 = vector.broadcast %cst_63 : f32 to vector<2x128xf32>
    %106 = arith.cmpf ogt, %104, %105 : vector<2x128xf32>
    %107 = arith.extui %106 : vector<2x128xi1> to vector<2x128xi32>
    %108 = arith.sitofp %107 : vector<2x128xi32> to vector<2x128xf32>
    %109 = arith.addf %91, %108 : vector<2x128xf32>
    %c10 = arith.constant 10 : index
    %c0_64 = arith.constant 0 : index
    %110 = vector.load %arg4[%c10, %c0_64] : memref<40x128xf32, #tpu.memory_space<vmem>>, vector<2x128xf32>
    tpu.vector_store %arg4[%c10, %c0_64], %102 {strides = array<i32>} : memref<40x128xf32, #tpu.memory_space<vmem>>, vector<2x128xf32>,
    %c10_65 = arith.constant 10 : index
    %c0_66 = arith.constant 0 : index
    %111 = vector.load %arg5[%c10_65, %c0_66] : memref<40x128xf32, #tpu.memory_space<vmem>>, vector<2x128xf32>
    tpu.vector_store %arg5[%c10_65, %c0_66], %108 {strides = array<i32>} : memref<40x128xf32, #tpu.memory_space<vmem>>, vector<2x128xf32>,
    %c6_67 = arith.constant 6 : index
    %c0_68 = arith.constant 0 : index
    %c0_69 = arith.constant 0 : index
    %112 = vector.load %arg1[%c6_67, %c0_68, %c0_69] : memref<20x30x128xf32, #tpu.memory_space<vmem>>, vector<1x30x128xf32>
    %113 = vector.shape_cast %112 : vector<1x30x128xf32> to vector<30x128xf32>
    %cst_70 = arith.constant dense<0.000000e+00> : vector<2x128xf32>
    %114 = tpu.matmul %0, %113, %cst_70 {dimension_numbers = #tpu.dot_dimension_numbers<[1], [0], [0], [1], [0, 0, 1, 1], [], []>} : vector<2x30xf32>, vector<30x128xf32>, vector<2x128xf32> -> vector<2x128xf32>
    %cst_71 = arith.constant 3.000000e-01 : f32
    %115 = vector.broadcast %cst_71 : f32 to vector<2x128xf32>
    %116 = arith.mulf %115, %102 : vector<2x128xf32>
    %cst_72 = arith.constant 1.000000e+00 : f32
    %117 = vector.broadcast %cst_72 : f32 to vector<2x128xf32>
    %118 = arith.subf %117, %108 : vector<2x128xf32>
    %119 = arith.mulf %116, %118 : vector<2x128xf32>
    %120 = arith.addf %119, %114 : vector<2x128xf32>
    %cst_73 = arith.constant 3.000000e-01 : f32
    %121 = vector.broadcast %cst_73 : f32 to vector<2x128xf32>
    %122 = arith.subf %120, %121 : vector<2x128xf32>
    %cst_74 = arith.constant 0.000000e+00 : f32
    %123 = vector.broadcast %cst_74 : f32 to vector<2x128xf32>
    %124 = arith.cmpf ogt, %122, %123 : vector<2x128xf32>
    %125 = arith.extui %124 : vector<2x128xi1> to vector<2x128xi32>
    %126 = arith.sitofp %125 : vector<2x128xi32> to vector<2x128xf32>
    %127 = arith.addf %109, %126 : vector<2x128xf32>
    %c12 = arith.constant 12 : index
    %c0_75 = arith.constant 0 : index
    %128 = vector.load %arg4[%c12, %c0_75] : memref<40x128xf32, #tpu.memory_space<vmem>>, vector<2x128xf32>
    tpu.vector_store %arg4[%c12, %c0_75], %120 {strides = array<i32>} : memref<40x128xf32, #tpu.memory_space<vmem>>, vector<2x128xf32>,
    %c12_76 = arith.constant 12 : index
    %c0_77 = arith.constant 0 : index
    %129 = vector.load %arg5[%c12_76, %c0_77] : memref<40x128xf32, #tpu.memory_space<vmem>>, vector<2x128xf32>
    tpu.vector_store %arg5[%c12_76, %c0_77], %126 {strides = array<i32>} : memref<40x128xf32, #tpu.memory_space<vmem>>, vector<2x128xf32>,
    %c7 = arith.constant 7 : index
    %c0_78 = arith.constant 0 : index
    %c0_79 = arith.constant 0 : index
    %130 = vector.load %arg1[%c7, %c0_78, %c0_79] : memref<20x30x128xf32, #tpu.memory_space<vmem>>, vector<1x30x128xf32>
    %131 = vector.shape_cast %130 : vector<1x30x128xf32> to vector<30x128xf32>
    %cst_80 = arith.constant dense<0.000000e+00> : vector<2x128xf32>
    %132 = tpu.matmul %0, %131, %cst_80 {dimension_numbers = #tpu.dot_dimension_numbers<[1], [0], [0], [1], [0, 0, 1, 1], [], []>} : vector<2x30xf32>, vector<30x128xf32>, vector<2x128xf32> -> vector<2x128xf32>
    %cst_81 = arith.constant 3.000000e-01 : f32
    %133 = vector.broadcast %cst_81 : f32 to vector<2x128xf32>
    %134 = arith.mulf %133, %120 : vector<2x128xf32>
    %cst_82 = arith.constant 1.000000e+00 : f32
    %135 = vector.broadcast %cst_82 : f32 to vector<2x128xf32>
    %136 = arith.subf %135, %126 : vector<2x128xf32>
    %137 = arith.mulf %134, %136 : vector<2x128xf32>
    %138 = arith.addf %137, %132 : vector<2x128xf32>
    %cst_83 = arith.constant 3.000000e-01 : f32
    %139 = vector.broadcast %cst_83 : f32 to vector<2x128xf32>
    %140 = arith.subf %138, %139 : vector<2x128xf32>
    %cst_84 = arith.constant 0.000000e+00 : f32
    %141 = vector.broadcast %cst_84 : f32 to vector<2x128xf32>
    %142 = arith.cmpf ogt, %140, %141 : vector<2x128xf32>
    %143 = arith.extui %142 : vector<2x128xi1> to vector<2x128xi32>
    %144 = arith.sitofp %143 : vector<2x128xi32> to vector<2x128xf32>
    %145 = arith.addf %127, %144 : vector<2x128xf32>
    %c14 = arith.constant 14 : index
    %c0_85 = arith.constant 0 : index
    %146 = vector.load %arg4[%c14, %c0_85] : memref<40x128xf32, #tpu.memory_space<vmem>>, vector<2x128xf32>
    tpu.vector_store %arg4[%c14, %c0_85], %138 {strides = array<i32>} : memref<40x128xf32, #tpu.memory_space<vmem>>, vector<2x128xf32>,
    %c14_86 = arith.constant 14 : index
    %c0_87 = arith.constant 0 : index
    %147 = vector.load %arg5[%c14_86, %c0_87] : memref<40x128xf32, #tpu.memory_space<vmem>>, vector<2x128xf32>
    tpu.vector_store %arg5[%c14_86, %c0_87], %144 {strides = array<i32>} : memref<40x128xf32, #tpu.memory_space<vmem>>, vector<2x128xf32>,
    %c8_88 = arith.constant 8 : index
    %c0_89 = arith.constant 0 : index
    %c0_90 = arith.constant 0 : index
    %148 = vector.load %arg1[%c8_88, %c0_89, %c0_90] : memref<20x30x128xf32, #tpu.memory_space<vmem>>, vector<1x30x128xf32>
    %149 = vector.shape_cast %148 : vector<1x30x128xf32> to vector<30x128xf32>
    %cst_91 = arith.constant dense<0.000000e+00> : vector<2x128xf32>
    %150 = tpu.matmul %0, %149, %cst_91 {dimension_numbers = #tpu.dot_dimension_numbers<[1], [0], [0], [1], [0, 0, 1, 1], [], []>} : vector<2x30xf32>, vector<30x128xf32>, vector<2x128xf32> -> vector<2x128xf32>
    %cst_92 = arith.constant 3.000000e-01 : f32
    %151 = vector.broadcast %cst_92 : f32 to vector<2x128xf32>
    %152 = arith.mulf %151, %138 : vector<2x128xf32>
    %cst_93 = arith.constant 1.000000e+00 : f32
    %153 = vector.broadcast %cst_93 : f32 to vector<2x128xf32>
    %154 = arith.subf %153, %144 : vector<2x128xf32>
    %155 = arith.mulf %152, %154 : vector<2x128xf32>
    %156 = arith.addf %155, %150 : vector<2x128xf32>
    %cst_94 = arith.constant 3.000000e-01 : f32
    %157 = vector.broadcast %cst_94 : f32 to vector<2x128xf32>
    %158 = arith.subf %156, %157 : vector<2x128xf32>
    %cst_95 = arith.constant 0.000000e+00 : f32
    %159 = vector.broadcast %cst_95 : f32 to vector<2x128xf32>
    %160 = arith.cmpf ogt, %158, %159 : vector<2x128xf32>
    %161 = arith.extui %160 : vector<2x128xi1> to vector<2x128xi32>
    %162 = arith.sitofp %161 : vector<2x128xi32> to vector<2x128xf32>
    %163 = arith.addf %145, %162 : vector<2x128xf32>
    %c16 = arith.constant 16 : index
    %c0_96 = arith.constant 0 : index
    %164 = vector.load %arg4[%c16, %c0_96] : memref<40x128xf32, #tpu.memory_space<vmem>>, vector<2x128xf32>
    tpu.vector_store %arg4[%c16, %c0_96], %156 {strides = array<i32>} : memref<40x128xf32, #tpu.memory_space<vmem>>, vector<2x128xf32>,
    %c16_97 = arith.constant 16 : index
    %c0_98 = arith.constant 0 : index
    %165 = vector.load %arg5[%c16_97, %c0_98] : memref<40x128xf32, #tpu.memory_space<vmem>>, vector<2x128xf32>
    tpu.vector_store %arg5[%c16_97, %c0_98], %162 {strides = array<i32>} : memref<40x128xf32, #tpu.memory_space<vmem>>, vector<2x128xf32>,
    %c9 = arith.constant 9 : index
    %c0_99 = arith.constant 0 : index
    %c0_100 = arith.constant 0 : index
    %166 = vector.load %arg1[%c9, %c0_99, %c0_100] : memref<20x30x128xf32, #tpu.memory_space<vmem>>, vector<1x30x128xf32>
    %167 = vector.shape_cast %166 : vector<1x30x128xf32> to vector<30x128xf32>
    %cst_101 = arith.constant dense<0.000000e+00> : vector<2x128xf32>
    %168 = tpu.matmul %0, %167, %cst_101 {dimension_numbers = #tpu.dot_dimension_numbers<[1], [0], [0], [1], [0, 0, 1, 1], [], []>} : vector<2x30xf32>, vector<30x128xf32>, vector<2x128xf32> -> vector<2x128xf32>
    %cst_102 = arith.constant 3.000000e-01 : f32
    %169 = vector.broadcast %cst_102 : f32 to vector<2x128xf32>
    %170 = arith.mulf %169, %156 : vector<2x128xf32>
    %cst_103 = arith.constant 1.000000e+00 : f32
    %171 = vector.broadcast %cst_103 : f32 to vector<2x128xf32>
    %172 = arith.subf %171, %162 : vector<2x128xf32>
    %173 = arith.mulf %170, %172 : vector<2x128xf32>
    %174 = arith.addf %173, %168 : vector<2x128xf32>
    %cst_104 = arith.constant 3.000000e-01 : f32
    %175 = vector.broadcast %cst_104 : f32 to vector<2x128xf32>
    %176 = arith.subf %174, %175 : vector<2x128xf32>
    %cst_105 = arith.constant 0.000000e+00 : f32
    %177 = vector.broadcast %cst_105 : f32 to vector<2x128xf32>
    %178 = arith.cmpf ogt, %176, %177 : vector<2x128xf32>
    %179 = arith.extui %178 : vector<2x128xi1> to vector<2x128xi32>
    %180 = arith.sitofp %179 : vector<2x128xi32> to vector<2x128xf32>
    %181 = arith.addf %163, %180 : vector<2x128xf32>
    %c18 = arith.constant 18 : index
    %c0_106 = arith.constant 0 : index
    %182 = vector.load %arg4[%c18, %c0_106] : memref<40x128xf32, #tpu.memory_space<vmem>>, vector<2x128xf32>
    tpu.vector_store %arg4[%c18, %c0_106], %174 {strides = array<i32>} : memref<40x128xf32, #tpu.memory_space<vmem>>, vector<2x128xf32>,
    %c18_107 = arith.constant 18 : index
    %c0_108 = arith.constant 0 : index
    %183 = vector.load %arg5[%c18_107, %c0_108] : memref<40x128xf32, #tpu.memory_space<vmem>>, vector<2x128xf32>
    tpu.vector_store %arg5[%c18_107, %c0_108], %180 {strides = array<i32>} : memref<40x128xf32, #tpu.memory_space<vmem>>, vector<2x128xf32>,
    %c10_109 = arith.constant 10 : index
    %c0_110 = arith.constant 0 : index
    %c0_111 = arith.constant 0 : index
    %184 = vector.load %arg1[%c10_109, %c0_110, %c0_111] : memref<20x30x128xf32, #tpu.memory_space<vmem>>, vector<1x30x128xf32>
    %185 = vector.shape_cast %184 : vector<1x30x128xf32> to vector<30x128xf32>
    %cst_112 = arith.constant dense<0.000000e+00> : vector<2x128xf32>
    %186 = tpu.matmul %0, %185, %cst_112 {dimension_numbers = #tpu.dot_dimension_numbers<[1], [0], [0], [1], [0, 0, 1, 1], [], []>} : vector<2x30xf32>, vector<30x128xf32>, vector<2x128xf32> -> vector<2x128xf32>
    %cst_113 = arith.constant 3.000000e-01 : f32
    %187 = vector.broadcast %cst_113 : f32 to vector<2x128xf32>
    %188 = arith.mulf %187, %174 : vector<2x128xf32>
    %cst_114 = arith.constant 1.000000e+00 : f32
    %189 = vector.broadcast %cst_114 : f32 to vector<2x128xf32>
    %190 = arith.subf %189, %180 : vector<2x128xf32>
    %191 = arith.mulf %188, %190 : vector<2x128xf32>
    %192 = arith.addf %191, %186 : vector<2x128xf32>
    %cst_115 = arith.constant 3.000000e-01 : f32
    %193 = vector.broadcast %cst_115 : f32 to vector<2x128xf32>
    %194 = arith.subf %192, %193 : vector<2x128xf32>
    %cst_116 = arith.constant 0.000000e+00 : f32
    %195 = vector.broadcast %cst_116 : f32 to vector<2x128xf32>
    %196 = arith.cmpf ogt, %194, %195 : vector<2x128xf32>
    %197 = arith.extui %196 : vector<2x128xi1> to vector<2x128xi32>
    %198 = arith.sitofp %197 : vector<2x128xi32> to vector<2x128xf32>
    %199 = arith.addf %181, %198 : vector<2x128xf32>
    %c20 = arith.constant 20 : index
    %c0_117 = arith.constant 0 : index
    %200 = vector.load %arg4[%c20, %c0_117] : memref<40x128xf32, #tpu.memory_space<vmem>>, vector<2x128xf32>
    tpu.vector_store %arg4[%c20, %c0_117], %192 {strides = array<i32>} : memref<40x128xf32, #tpu.memory_space<vmem>>, vector<2x128xf32>,
    %c20_118 = arith.constant 20 : index
    %c0_119 = arith.constant 0 : index
    %201 = vector.load %arg5[%c20_118, %c0_119] : memref<40x128xf32, #tpu.memory_space<vmem>>, vector<2x128xf32>
    tpu.vector_store %arg5[%c20_118, %c0_119], %198 {strides = array<i32>} : memref<40x128xf32, #tpu.memory_space<vmem>>, vector<2x128xf32>,
    %c11 = arith.constant 11 : index
    %c0_120 = arith.constant 0 : index
    %c0_121 = arith.constant 0 : index
    %202 = vector.load %arg1[%c11, %c0_120, %c0_121] : memref<20x30x128xf32, #tpu.memory_space<vmem>>, vector<1x30x128xf32>
    %203 = vector.shape_cast %202 : vector<1x30x128xf32> to vector<30x128xf32>
    %cst_122 = arith.constant dense<0.000000e+00> : vector<2x128xf32>
    %204 = tpu.matmul %0, %203, %cst_122 {dimension_numbers = #tpu.dot_dimension_numbers<[1], [0], [0], [1], [0, 0, 1, 1], [], []>} : vector<2x30xf32>, vector<30x128xf32>, vector<2x128xf32> -> vector<2x128xf32>
    %cst_123 = arith.constant 3.000000e-01 : f32
    %205 = vector.broadcast %cst_123 : f32 to vector<2x128xf32>
    %206 = arith.mulf %205, %192 : vector<2x128xf32>
    %cst_124 = arith.constant 1.000000e+00 : f32
    %207 = vector.broadcast %cst_124 : f32 to vector<2x128xf32>
    %208 = arith.subf %207, %198 : vector<2x128xf32>
    %209 = arith.mulf %206, %208 : vector<2x128xf32>
    %210 = arith.addf %209, %204 : vector<2x128xf32>
    %cst_125 = arith.constant 3.000000e-01 : f32
    %211 = vector.broadcast %cst_125 : f32 to vector<2x128xf32>
    %212 = arith.subf %210, %211 : vector<2x128xf32>
    %cst_126 = arith.constant 0.000000e+00 : f32
    %213 = vector.broadcast %cst_126 : f32 to vector<2x128xf32>
    %214 = arith.cmpf ogt, %212, %213 : vector<2x128xf32>
    %215 = arith.extui %214 : vector<2x128xi1> to vector<2x128xi32>
    %216 = arith.sitofp %215 : vector<2x128xi32> to vector<2x128xf32>
    %217 = arith.addf %199, %216 : vector<2x128xf32>
    %c22 = arith.constant 22 : index
    %c0_127 = arith.constant 0 : index
    %218 = vector.load %arg4[%c22, %c0_127] : memref<40x128xf32, #tpu.memory_space<vmem>>, vector<2x128xf32>
    tpu.vector_store %arg4[%c22, %c0_127], %210 {strides = array<i32>} : memref<40x128xf32, #tpu.memory_space<vmem>>, vector<2x128xf32>,
    %c22_128 = arith.constant 22 : index
    %c0_129 = arith.constant 0 : index
    %219 = vector.load %arg5[%c22_128, %c0_129] : memref<40x128xf32, #tpu.memory_space<vmem>>, vector<2x128xf32>
    tpu.vector_store %arg5[%c22_128, %c0_129], %216 {strides = array<i32>} : memref<40x128xf32, #tpu.memory_space<vmem>>, vector<2x128xf32>,
    %c12_130 = arith.constant 12 : index
    %c0_131 = arith.constant 0 : index
    %c0_132 = arith.constant 0 : index
    %220 = vector.load %arg1[%c12_130, %c0_131, %c0_132] : memref<20x30x128xf32, #tpu.memory_space<vmem>>, vector<1x30x128xf32>
    %221 = vector.shape_cast %220 : vector<1x30x128xf32> to vector<30x128xf32>
    %cst_133 = arith.constant dense<0.000000e+00> : vector<2x128xf32>
    %222 = tpu.matmul %0, %221, %cst_133 {dimension_numbers = #tpu.dot_dimension_numbers<[1], [0], [0], [1], [0, 0, 1, 1], [], []>} : vector<2x30xf32>, vector<30x128xf32>, vector<2x128xf32> -> vector<2x128xf32>
    %cst_134 = arith.constant 3.000000e-01 : f32
    %223 = vector.broadcast %cst_134 : f32 to vector<2x128xf32>
    %224 = arith.mulf %223, %210 : vector<2x128xf32>
    %cst_135 = arith.constant 1.000000e+00 : f32
    %225 = vector.broadcast %cst_135 : f32 to vector<2x128xf32>
    %226 = arith.subf %225, %216 : vector<2x128xf32>
    %227 = arith.mulf %224, %226 : vector<2x128xf32>
    %228 = arith.addf %227, %222 : vector<2x128xf32>
    %cst_136 = arith.constant 3.000000e-01 : f32
    %229 = vector.broadcast %cst_136 : f32 to vector<2x128xf32>
    %230 = arith.subf %228, %229 : vector<2x128xf32>
    %cst_137 = arith.constant 0.000000e+00 : f32
    %231 = vector.broadcast %cst_137 : f32 to vector<2x128xf32>
    %232 = arith.cmpf ogt, %230, %231 : vector<2x128xf32>
    %233 = arith.extui %232 : vector<2x128xi1> to vector<2x128xi32>
    %234 = arith.sitofp %233 : vector<2x128xi32> to vector<2x128xf32>
    %235 = arith.addf %217, %234 : vector<2x128xf32>
    %c24 = arith.constant 24 : index
    %c0_138 = arith.constant 0 : index
    %236 = vector.load %arg4[%c24, %c0_138] : memref<40x128xf32, #tpu.memory_space<vmem>>, vector<2x128xf32>
    tpu.vector_store %arg4[%c24, %c0_138], %228 {strides = array<i32>} : memref<40x128xf32, #tpu.memory_space<vmem>>, vector<2x128xf32>,
    %c24_139 = arith.constant 24 : index
    %c0_140 = arith.constant 0 : index
    %237 = vector.load %arg5[%c24_139, %c0_140] : memref<40x128xf32, #tpu.memory_space<vmem>>, vector<2x128xf32>
    tpu.vector_store %arg5[%c24_139, %c0_140], %234 {strides = array<i32>} : memref<40x128xf32, #tpu.memory_space<vmem>>, vector<2x128xf32>,
    %c13 = arith.constant 13 : index
    %c0_141 = arith.constant 0 : index
    %c0_142 = arith.constant 0 : index
    %238 = vector.load %arg1[%c13, %c0_141, %c0_142] : memref<20x30x128xf32, #tpu.memory_space<vmem>>, vector<1x30x128xf32>
    %239 = vector.shape_cast %238 : vector<1x30x128xf32> to vector<30x128xf32>
    %cst_143 = arith.constant dense<0.000000e+00> : vector<2x128xf32>
    %240 = tpu.matmul %0, %239, %cst_143 {dimension_numbers = #tpu.dot_dimension_numbers<[1], [0], [0], [1], [0, 0, 1, 1], [], []>} : vector<2x30xf32>, vector<30x128xf32>, vector<2x128xf32> -> vector<2x128xf32>
    %cst_144 = arith.constant 3.000000e-01 : f32
    %241 = vector.broadcast %cst_144 : f32 to vector<2x128xf32>
    %242 = arith.mulf %241, %228 : vector<2x128xf32>
    %cst_145 = arith.constant 1.000000e+00 : f32
    %243 = vector.broadcast %cst_145 : f32 to vector<2x128xf32>
    %244 = arith.subf %243, %234 : vector<2x128xf32>
    %245 = arith.mulf %242, %244 : vector<2x128xf32>
    %246 = arith.addf %245, %240 : vector<2x128xf32>
    %cst_146 = arith.constant 3.000000e-01 : f32
    %247 = vector.broadcast %cst_146 : f32 to vector<2x128xf32>
    %248 = arith.subf %246, %247 : vector<2x128xf32>
    %cst_147 = arith.constant 0.000000e+00 : f32
    %249 = vector.broadcast %cst_147 : f32 to vector<2x128xf32>
    %250 = arith.cmpf ogt, %248, %249 : vector<2x128xf32>
    %251 = arith.extui %250 : vector<2x128xi1> to vector<2x128xi32>
    %252 = arith.sitofp %251 : vector<2x128xi32> to vector<2x128xf32>
    %253 = arith.addf %235, %252 : vector<2x128xf32>
    %c26 = arith.constant 26 : index
    %c0_148 = arith.constant 0 : index
    %254 = vector.load %arg4[%c26, %c0_148] : memref<40x128xf32, #tpu.memory_space<vmem>>, vector<2x128xf32>
    tpu.vector_store %arg4[%c26, %c0_148], %246 {strides = array<i32>} : memref<40x128xf32, #tpu.memory_space<vmem>>, vector<2x128xf32>,
    %c26_149 = arith.constant 26 : index
    %c0_150 = arith.constant 0 : index
    %255 = vector.load %arg5[%c26_149, %c0_150] : memref<40x128xf32, #tpu.memory_space<vmem>>, vector<2x128xf32>
    tpu.vector_store %arg5[%c26_149, %c0_150], %252 {strides = array<i32>} : memref<40x128xf32, #tpu.memory_space<vmem>>, vector<2x128xf32>,
    %c14_151 = arith.constant 14 : index
    %c0_152 = arith.constant 0 : index
    %c0_153 = arith.constant 0 : index
    %256 = vector.load %arg1[%c14_151, %c0_152, %c0_153] : memref<20x30x128xf32, #tpu.memory_space<vmem>>, vector<1x30x128xf32>
    %257 = vector.shape_cast %256 : vector<1x30x128xf32> to vector<30x128xf32>
    %cst_154 = arith.constant dense<0.000000e+00> : vector<2x128xf32>
    %258 = tpu.matmul %0, %257, %cst_154 {dimension_numbers = #tpu.dot_dimension_numbers<[1], [0], [0], [1], [0, 0, 1, 1], [], []>} : vector<2x30xf32>, vector<30x128xf32>, vector<2x128xf32> -> vector<2x128xf32>
    %cst_155 = arith.constant 3.000000e-01 : f32
    %259 = vector.broadcast %cst_155 : f32 to vector<2x128xf32>
    %260 = arith.mulf %259, %246 : vector<2x128xf32>
    %cst_156 = arith.constant 1.000000e+00 : f32
    %261 = vector.broadcast %cst_156 : f32 to vector<2x128xf32>
    %262 = arith.subf %261, %252 : vector<2x128xf32>
    %263 = arith.mulf %260, %262 : vector<2x128xf32>
    %264 = arith.addf %263, %258 : vector<2x128xf32>
    %cst_157 = arith.constant 3.000000e-01 : f32
    %265 = vector.broadcast %cst_157 : f32 to vector<2x128xf32>
    %266 = arith.subf %264, %265 : vector<2x128xf32>
    %cst_158 = arith.constant 0.000000e+00 : f32
    %267 = vector.broadcast %cst_158 : f32 to vector<2x128xf32>
    %268 = arith.cmpf ogt, %266, %267 : vector<2x128xf32>
    %269 = arith.extui %268 : vector<2x128xi1> to vector<2x128xi32>
    %270 = arith.sitofp %269 : vector<2x128xi32> to vector<2x128xf32>
    %271 = arith.addf %253, %270 : vector<2x128xf32>
    %c28 = arith.constant 28 : index
    %c0_159 = arith.constant 0 : index
    %272 = vector.load %arg4[%c28, %c0_159] : memref<40x128xf32, #tpu.memory_space<vmem>>, vector<2x128xf32>
    tpu.vector_store %arg4[%c28, %c0_159], %264 {strides = array<i32>} : memref<40x128xf32, #tpu.memory_space<vmem>>, vector<2x128xf32>,
    %c28_160 = arith.constant 28 : index
    %c0_161 = arith.constant 0 : index
    %273 = vector.load %arg5[%c28_160, %c0_161] : memref<40x128xf32, #tpu.memory_space<vmem>>, vector<2x128xf32>
    tpu.vector_store %arg5[%c28_160, %c0_161], %270 {strides = array<i32>} : memref<40x128xf32, #tpu.memory_space<vmem>>, vector<2x128xf32>,
    %c15 = arith.constant 15 : index
    %c0_162 = arith.constant 0 : index
    %c0_163 = arith.constant 0 : index
    %274 = vector.load %arg1[%c15, %c0_162, %c0_163] : memref<20x30x128xf32, #tpu.memory_space<vmem>>, vector<1x30x128xf32>
    %275 = vector.shape_cast %274 : vector<1x30x128xf32> to vector<30x128xf32>
    %cst_164 = arith.constant dense<0.000000e+00> : vector<2x128xf32>
    %276 = tpu.matmul %0, %275, %cst_164 {dimension_numbers = #tpu.dot_dimension_numbers<[1], [0], [0], [1], [0, 0, 1, 1], [], []>} : vector<2x30xf32>, vector<30x128xf32>, vector<2x128xf32> -> vector<2x128xf32>
    %cst_165 = arith.constant 3.000000e-01 : f32
    %277 = vector.broadcast %cst_165 : f32 to vector<2x128xf32>
    %278 = arith.mulf %277, %264 : vector<2x128xf32>
    %cst_166 = arith.constant 1.000000e+00 : f32
    %279 = vector.broadcast %cst_166 : f32 to vector<2x128xf32>
    %280 = arith.subf %279, %270 : vector<2x128xf32>
    %281 = arith.mulf %278, %280 : vector<2x128xf32>
    %282 = arith.addf %281, %276 : vector<2x128xf32>
    %cst_167 = arith.constant 3.000000e-01 : f32
    %283 = vector.broadcast %cst_167 : f32 to vector<2x128xf32>
    %284 = arith.subf %282, %283 : vector<2x128xf32>
    %cst_168 = arith.constant 0.000000e+00 : f32
    %285 = vector.broadcast %cst_168 : f32 to vector<2x128xf32>
    %286 = arith.cmpf ogt, %284, %285 : vector<2x128xf32>
    %287 = arith.extui %286 : vector<2x128xi1> to vector<2x128xi32>
    %288 = arith.sitofp %287 : vector<2x128xi32> to vector<2x128xf32>
    %289 = arith.addf %271, %288 : vector<2x128xf32>
    %c30 = arith.constant 30 : index
    %c0_169 = arith.constant 0 : index
    %290 = vector.load %arg4[%c30, %c0_169] : memref<40x128xf32, #tpu.memory_space<vmem>>, vector<2x128xf32>
    tpu.vector_store %arg4[%c30, %c0_169], %282 {strides = array<i32>} : memref<40x128xf32, #tpu.memory_space<vmem>>, vector<2x128xf32>,
    %c30_170 = arith.constant 30 : index
    %c0_171 = arith.constant 0 : index
    %291 = vector.load %arg5[%c30_170, %c0_171] : memref<40x128xf32, #tpu.memory_space<vmem>>, vector<2x128xf32>
    tpu.vector_store %arg5[%c30_170, %c0_171], %288 {strides = array<i32>} : memref<40x128xf32, #tpu.memory_space<vmem>>, vector<2x128xf32>,
    %c16_172 = arith.constant 16 : index
    %c0_173 = arith.constant 0 : index
    %c0_174 = arith.constant 0 : index
    %292 = vector.load %arg1[%c16_172, %c0_173, %c0_174] : memref<20x30x128xf32, #tpu.memory_space<vmem>>, vector<1x30x128xf32>
    %293 = vector.shape_cast %292 : vector<1x30x128xf32> to vector<30x128xf32>
    %cst_175 = arith.constant dense<0.000000e+00> : vector<2x128xf32>
    %294 = tpu.matmul %0, %293, %cst_175 {dimension_numbers = #tpu.dot_dimension_numbers<[1], [0], [0], [1], [0, 0, 1, 1], [], []>} : vector<2x30xf32>, vector<30x128xf32>, vector<2x128xf32> -> vector<2x128xf32>
    %cst_176 = arith.constant 3.000000e-01 : f32
    %295 = vector.broadcast %cst_176 : f32 to vector<2x128xf32>
    %296 = arith.mulf %295, %282 : vector<2x128xf32>
    %cst_177 = arith.constant 1.000000e+00 : f32
    %297 = vector.broadcast %cst_177 : f32 to vector<2x128xf32>
    %298 = arith.subf %297, %288 : vector<2x128xf32>
    %299 = arith.mulf %296, %298 : vector<2x128xf32>
    %300 = arith.addf %299, %294 : vector<2x128xf32>
    %cst_178 = arith.constant 3.000000e-01 : f32
    %301 = vector.broadcast %cst_178 : f32 to vector<2x128xf32>
    %302 = arith.subf %300, %301 : vector<2x128xf32>
    %cst_179 = arith.constant 0.000000e+00 : f32
    %303 = vector.broadcast %cst_179 : f32 to vector<2x128xf32>
    %304 = arith.cmpf ogt, %302, %303 : vector<2x128xf32>
    %305 = arith.extui %304 : vector<2x128xi1> to vector<2x128xi32>
    %306 = arith.sitofp %305 : vector<2x128xi32> to vector<2x128xf32>
    %307 = arith.addf %289, %306 : vector<2x128xf32>
    %c32 = arith.constant 32 : index
    %c0_180 = arith.constant 0 : index
    %308 = vector.load %arg4[%c32, %c0_180] : memref<40x128xf32, #tpu.memory_space<vmem>>, vector<2x128xf32>
    tpu.vector_store %arg4[%c32, %c0_180], %300 {strides = array<i32>} : memref<40x128xf32, #tpu.memory_space<vmem>>, vector<2x128xf32>,
    %c32_181 = arith.constant 32 : index
    %c0_182 = arith.constant 0 : index
    %309 = vector.load %arg5[%c32_181, %c0_182] : memref<40x128xf32, #tpu.memory_space<vmem>>, vector<2x128xf32>
    tpu.vector_store %arg5[%c32_181, %c0_182], %306 {strides = array<i32>} : memref<40x128xf32, #tpu.memory_space<vmem>>, vector<2x128xf32>,
    %c17 = arith.constant 17 : index
    %c0_183 = arith.constant 0 : index
    %c0_184 = arith.constant 0 : index
    %310 = vector.load %arg1[%c17, %c0_183, %c0_184] : memref<20x30x128xf32, #tpu.memory_space<vmem>>, vector<1x30x128xf32>
    %311 = vector.shape_cast %310 : vector<1x30x128xf32> to vector<30x128xf32>
    %cst_185 = arith.constant dense<0.000000e+00> : vector<2x128xf32>
    %312 = tpu.matmul %0, %311, %cst_185 {dimension_numbers = #tpu.dot_dimension_numbers<[1], [0], [0], [1], [0, 0, 1, 1], [], []>} : vector<2x30xf32>, vector<30x128xf32>, vector<2x128xf32> -> vector<2x128xf32>
    %cst_186 = arith.constant 3.000000e-01 : f32
    %313 = vector.broadcast %cst_186 : f32 to vector<2x128xf32>
    %314 = arith.mulf %313, %300 : vector<2x128xf32>
    %cst_187 = arith.constant 1.000000e+00 : f32
    %315 = vector.broadcast %cst_187 : f32 to vector<2x128xf32>
    %316 = arith.subf %315, %306 : vector<2x128xf32>
    %317 = arith.mulf %314, %316 : vector<2x128xf32>
    %318 = arith.addf %317, %312 : vector<2x128xf32>
    %cst_188 = arith.constant 3.000000e-01 : f32
    %319 = vector.broadcast %cst_188 : f32 to vector<2x128xf32>
    %320 = arith.subf %318, %319 : vector<2x128xf32>
    %cst_189 = arith.constant 0.000000e+00 : f32
    %321 = vector.broadcast %cst_189 : f32 to vector<2x128xf32>
    %322 = arith.cmpf ogt, %320, %321 : vector<2x128xf32>
    %323 = arith.extui %322 : vector<2x128xi1> to vector<2x128xi32>
    %324 = arith.sitofp %323 : vector<2x128xi32> to vector<2x128xf32>
    %325 = arith.addf %307, %324 : vector<2x128xf32>
    %c34 = arith.constant 34 : index
    %c0_190 = arith.constant 0 : index
    %326 = vector.load %arg4[%c34, %c0_190] : memref<40x128xf32, #tpu.memory_space<vmem>>, vector<2x128xf32>
    tpu.vector_store %arg4[%c34, %c0_190], %318 {strides = array<i32>} : memref<40x128xf32, #tpu.memory_space<vmem>>, vector<2x128xf32>,
    %c34_191 = arith.constant 34 : index
    %c0_192 = arith.constant 0 : index
    %327 = vector.load %arg5[%c34_191, %c0_192] : memref<40x128xf32, #tpu.memory_space<vmem>>, vector<2x128xf32>
    tpu.vector_store %arg5[%c34_191, %c0_192], %324 {strides = array<i32>} : memref<40x128xf32, #tpu.memory_space<vmem>>, vector<2x128xf32>,
    %c18_193 = arith.constant 18 : index
    %c0_194 = arith.constant 0 : index
    %c0_195 = arith.constant 0 : index
    %328 = vector.load %arg1[%c18_193, %c0_194, %c0_195] : memref<20x30x128xf32, #tpu.memory_space<vmem>>, vector<1x30x128xf32>
    %329 = vector.shape_cast %328 : vector<1x30x128xf32> to vector<30x128xf32>
    %cst_196 = arith.constant dense<0.000000e+00> : vector<2x128xf32>
    %330 = tpu.matmul %0, %329, %cst_196 {dimension_numbers = #tpu.dot_dimension_numbers<[1], [0], [0], [1], [0, 0, 1, 1], [], []>} : vector<2x30xf32>, vector<30x128xf32>, vector<2x128xf32> -> vector<2x128xf32>
    %cst_197 = arith.constant 3.000000e-01 : f32
    %331 = vector.broadcast %cst_197 : f32 to vector<2x128xf32>
    %332 = arith.mulf %331, %318 : vector<2x128xf32>
    %cst_198 = arith.constant 1.000000e+00 : f32
    %333 = vector.broadcast %cst_198 : f32 to vector<2x128xf32>
    %334 = arith.subf %333, %324 : vector<2x128xf32>
    %335 = arith.mulf %332, %334 : vector<2x128xf32>
    %336 = arith.addf %335, %330 : vector<2x128xf32>
    %cst_199 = arith.constant 3.000000e-01 : f32
    %337 = vector.broadcast %cst_199 : f32 to vector<2x128xf32>
    %338 = arith.subf %336, %337 : vector<2x128xf32>
    %cst_200 = arith.constant 0.000000e+00 : f32
    %339 = vector.broadcast %cst_200 : f32 to vector<2x128xf32>
    %340 = arith.cmpf ogt, %338, %339 : vector<2x128xf32>
    %341 = arith.extui %340 : vector<2x128xi1> to vector<2x128xi32>
    %342 = arith.sitofp %341 : vector<2x128xi32> to vector<2x128xf32>
    %343 = arith.addf %325, %342 : vector<2x128xf32>
    %c36 = arith.constant 36 : index
    %c0_201 = arith.constant 0 : index
    %344 = vector.load %arg4[%c36, %c0_201] : memref<40x128xf32, #tpu.memory_space<vmem>>, vector<2x128xf32>
    tpu.vector_store %arg4[%c36, %c0_201], %336 {strides = array<i32>} : memref<40x128xf32, #tpu.memory_space<vmem>>, vector<2x128xf32>,
    %c36_202 = arith.constant 36 : index
    %c0_203 = arith.constant 0 : index
    %345 = vector.load %arg5[%c36_202, %c0_203] : memref<40x128xf32, #tpu.memory_space<vmem>>, vector<2x128xf32>
    tpu.vector_store %arg5[%c36_202, %c0_203], %342 {strides = array<i32>} : memref<40x128xf32, #tpu.memory_space<vmem>>, vector<2x128xf32>,
    %c19 = arith.constant 19 : index
    %c0_204 = arith.constant 0 : index
    %c0_205 = arith.constant 0 : index
    %346 = vector.load %arg1[%c19, %c0_204, %c0_205] : memref<20x30x128xf32, #tpu.memory_space<vmem>>, vector<1x30x128xf32>
    %347 = vector.shape_cast %346 : vector<1x30x128xf32> to vector<30x128xf32>
    %cst_206 = arith.constant dense<0.000000e+00> : vector<2x128xf32>
    %348 = tpu.matmul %0, %347, %cst_206 {dimension_numbers = #tpu.dot_dimension_numbers<[1], [0], [0], [1], [0, 0, 1, 1], [], []>} : vector<2x30xf32>, vector<30x128xf32>, vector<2x128xf32> -> vector<2x128xf32>
    %cst_207 = arith.constant 3.000000e-01 : f32
    %349 = vector.broadcast %cst_207 : f32 to vector<2x128xf32>
    %350 = arith.mulf %349, %336 : vector<2x128xf32>
    %cst_208 = arith.constant 1.000000e+00 : f32
    %351 = vector.broadcast %cst_208 : f32 to vector<2x128xf32>
    %352 = arith.subf %351, %342 : vector<2x128xf32>
    %353 = arith.mulf %350, %352 : vector<2x128xf32>
    %354 = arith.addf %353, %348 : vector<2x128xf32>
    %cst_209 = arith.constant 3.000000e-01 : f32
    %355 = vector.broadcast %cst_209 : f32 to vector<2x128xf32>
    %356 = arith.subf %354, %355 : vector<2x128xf32>
    %cst_210 = arith.constant 0.000000e+00 : f32
    %357 = vector.broadcast %cst_210 : f32 to vector<2x128xf32>
    %358 = arith.cmpf ogt, %356, %357 : vector<2x128xf32>
    %359 = arith.extui %358 : vector<2x128xi1> to vector<2x128xi32>
    %360 = arith.sitofp %359 : vector<2x128xi32> to vector<2x128xf32>
    %361 = arith.addf %343, %360 : vector<2x128xf32>
    %c38 = arith.constant 38 : index
    %c0_211 = arith.constant 0 : index
    %362 = vector.load %arg4[%c38, %c0_211] : memref<40x128xf32, #tpu.memory_space<vmem>>, vector<2x128xf32>
    tpu.vector_store %arg4[%c38, %c0_211], %354 {strides = array<i32>} : memref<40x128xf32, #tpu.memory_space<vmem>>, vector<2x128xf32>,
    %c38_212 = arith.constant 38 : index
    %c0_213 = arith.constant 0 : index
    %363 = vector.load %arg5[%c38_212, %c0_213] : memref<40x128xf32, #tpu.memory_space<vmem>>, vector<2x128xf32>
    tpu.vector_store %arg5[%c38_212, %c0_213], %360 {strides = array<i32>} : memref<40x128xf32, #tpu.memory_space<vmem>>, vector<2x128xf32>,
    %cst_214 = arith.constant 5.000000e-02 : f32
    %364 = vector.broadcast %cst_214 : f32 to vector<2x128xf32>
    %365 = arith.mulf %361, %364 : vector<2x128xf32>
    %c0_215 = arith.constant 0 : index
    %c0_216 = arith.constant 0 : index
    %366 = vector.load %arg3[%c0_215, %c0_216] : memref<2x128xf32, #tpu.memory_space<vmem>>, vector<2x128xf32>
    tpu.vector_store %arg3[%c0_215, %c0_216], %365 {strides = array<i32>} : memref<2x128xf32, #tpu.memory_space<vmem>>, vector<2x128xf32>,
    return
  }
  func.func @transform_0(%arg0: i32) -> (i32, i32, i32) {
    %c0_i32 = arith.constant 0 : i32
    %c0_i32_0 = arith.constant 0 : i32
    %c0_i32_1 = arith.constant 0 : i32
    return %c0_i32, %c0_i32_0, %arg0 : i32, i32, i32
  }
  func.func @transform_1(%arg0: i32) -> (i32, i32) {
    %c0_i32 = arith.constant 0 : i32
    %c0_i32_0 = arith.constant 0 : i32
    %c0_i32_1 = arith.constant 0 : i32
    return %c0_i32, %c0_i32_0 : i32, i32
  }
  func.func @transform_2(%arg0: i32) -> (i32, i32) {
    %c0_i32 = arith.constant 0 : i32
    %c0_i32_0 = arith.constant 0 : i32
    return %c0_i32, %arg0 : i32, i32
  }
  func.func @transform_3(%arg0: i32) -> (i32, i32) {
    %c0_i32 = arith.constant 0 : i32
    %c0_i32_0 = arith.constant 0 : i32
    return %c0_i32, %arg0 : i32, i32
  }
  func.func @transform_4(%arg0: i32) -> (i32, i32) {
    %c0_i32 = arith.constant 0 : i32
    %c0_i32_0 = arith.constant 0 : i32
    return %c0_i32, %arg0 : i32, i32
  }
}

</mosaic_0001>

<bundles_post_ra>
// kernel: spike_nn_forward.1
= control target key start
LH: loop header
LB: loop body
LE: loop exit
PB: predicated region body
PF: predicated region fallthrough
CT: control target
= control target key end

     0   :  { %v2429_v0 = vmov 0.0|0.0   ;;  %vm23_vm0 = vcmask 1045504   ;;  %vm2430_vm1 = vmmov 0   ;;  %v2431_v6 = vmov 0.0   ;;  %s3049_s0 = inlined_call_operand.vmem [shape: f32[20,30,128], index: 0, kind: input, shape index: {}]   ;;  %s3050_s1 = inlined_call_operand.vmem [shape: f32[2,30], index: 1, kind: input, shape index: {}]   ;;  %s3051_s3 = inlined_call_operand.vmem [shape: f32[40,128], index: 3, kind: output, shape index: {1}]   ;;  %s3052_s4 = inlined_call_operand.vmem [shape: f32[40,128], index: 4, kind: output, shape index: {2}]   ;;  %s3053_s2 = inlined_call_operand.vmem [shape: f32[2,128], index: 2, kind: output, shape index: {0}]  }
   0x1   :  { %2285 = vmatprep.subr.bf16.mxu0 %v2429_v0  ;;  %v15_v1 = vld [vmem:[%s3049_s0] sm:$0xff]  ;;  %v16_v2 = vld [vmem:[%s3049_s0 + $0x8] sm:$0xff]  ;;  %v17_v3 = vld [vmem:[%s3049_s0 + $0x10] sm:$0xff]  ;;  %2292 = vmatprep.subr.bf16.mxu1 %v2429_v0  ;;  %vm2432_vm2 = vmmov 1   ;;  %vm19_vm4 = vcmask 244736  }
   0x2   :  { %v2286_v4 = vpack.c.bf16 %v16_v2, %v15_v1  ;;  %v18_v5 = vld [vmem:[%s3049_s0 + $0x18] sm:$0x3f]  ;;  %2073 = vmatprep.mubr.msk.f32.mxu0 %vm2430_vm1, %v2431_v6  ;;  %2084 = vmatprep.mubr.msk.f32.mxu1 %vm2430_vm1, %v2431_v6  ;;  %v1813_v7 = vld [vmem:[%s3049_s0 + $0x20] sm:$0xff]  ;;  %v1814_v8 = vld [vmem:[%s3049_s0 + $0x28] sm:$0xff] }
   0x3   :  { %v1815_v9 = vld [vmem:[%s3049_s0 + $0x30] sm:$0xff]  ;;  %v2289_v10 = vpack.c.bf16 %v18_v5, %v17_v3  ;;  %v2293_v11 = vpack.c.bf16 %v1814_v8, %v1813_v7  ;;  %v1816_v12 = vld [vmem:[%s3049_s0 + $0x38] sm:$0x3f]  ;;  %vm2489_vm3 = vmpackc.low %vm23_vm0, %vm2432_vm2 }
   0x4   :  { %2287 = vmatpush3.bf16.msra.mxu0 %v2286_v4  ;;  %v1821_v14 = vld [vmem:[%s3049_s0 + $0x40] sm:$0xff]  ;;  %v1822_v15 = vld [vmem:[%s3049_s0 + $0x48] sm:$0xff]  ;;  %v2296_v16 = vpack.c.bf16 %v1816_v12, %v1815_v9  ;;  %v1823_v21 = vld [vmem:[%s3049_s0 + $0x50] sm:$0xff] }
   0x5   :  { %2288 = vmatprep.subr.bf16.mxu0 %v2429_v0  ;;  %2294 = vmatpush3.bf16.msra.mxu1 %v2293_v11  ;;  %v1829_v17 = vld [vmem:[%s3049_s0 + $0x60] sm:$0xff]  ;;  %v1830_v18 = vld [vmem:[%s3049_s0 + $0x68] sm:$0xff]  ;;  %v2300_v20 = vpack.c.bf16 %v1822_v15, %v1821_v14  ;;  %v1824_v22 = vld [vmem:[%s3049_s0 + $0x58] sm:$0x3f] }
   0x6   :  { %2295 = vmatprep.subr.bf16.mxu1 %v2429_v0  ;;  %v2511_v19 = vld [vmem:[%s3050_s1] sm:$0x3]  ;;  %v2307_v23 = vpack.c.bf16 %v1830_v18, %v1829_v17  ;;  %v1831_v24 = vld [vmem:[%s3049_s0 + $0x70] sm:$0xff]  ;;  %v1832_v25 = vld [vmem:[%s3049_s0 + $0x78] sm:$0x3f]  ;;  %v2303_v26 = vpack.c.bf16 %v1824_v22, %v1823_v21 }
   0x7   :  { %v1837_v27 = vld [vmem:[%s3049_s0 + $0x80] sm:$0xff]  ;;  %v1838_v28 = vld [vmem:[%s3049_s0 + $0x88] sm:$0xff]  ;;  %v2310_v29 = vpack.c.bf16 %v1832_v25, %v1831_v24  ;;  %v1839_v33 = vld [vmem:[%s3049_s0 + $0x90] sm:$0xff] }
   0x8   :  { %2291 = vmatpush3.bf16.msk.msra.mxu0 %vm2489_vm3, %v2289_v10  ;;  %v1845_v30 = vld [vmem:[%s3049_s0 + $0xa0] sm:$0xff]  ;;  %v1846_v31 = vld [vmem:[%s3049_s0 + $0xa8] sm:$0xff]  ;;  %v2314_v32 = vpack.c.bf16 %v1838_v28, %v1837_v27  ;;  %v1840_v34 = vld [vmem:[%s3049_s0 + $0x98] sm:$0x3f] }
   0x9   :  { %2299 = vmatprep.subr.bf16.mxu0 %v2429_v0  ;;  %2298 = vmatpush3.bf16.msk.msra.mxu1 %vm2489_vm3, %v2296_v16  ;;  %v2321_v35 = vpack.c.bf16 %v1846_v31, %v1845_v30  ;;  %v1847_v36 = vld [vmem:[%s3049_s0 + $0xb0] sm:$0xff]  ;;  %v1848_v37 = vld [vmem:[%s3049_s0 + $0xb8] sm:$0x3f]  ;;  %v2317_v38 = vpack.c.bf16 %v1840_v34, %v1839_v33  ;;  %v1853_v39 = vld [vmem:[%s3049_s0 + $0xc0] sm:$0xff] }
   0xa   :  { %2306 = vmatprep.subr.bf16.mxu1 %v2429_v0  ;;  %v1854_v40 = vld [vmem:[%s3049_s0 + $0xc8] sm:$0xff]  ;;  %v2324_v41 = vpack.c.bf16 %v1848_v37, %v1847_v36  ;;  %v1861_v42 = vld [vmem:[%s3049_s0 + $0xe0] sm:$0xff]  ;;  %v1855_v45 = vld [vmem:[%s3049_s0 + $0xd0] sm:$0xff] }
   0xb   :  { %2074 = vmatmul.mubr.msk.f32.vlgmr.msra.gmra.mrb[0].mxu0 %vm19_vm4, %v2511_v19  ;;  %v1862_v43 = vld [vmem:[%s3049_s0 + $0xe8] sm:$0xff]  ;;  %v2328_v44 = vpack.c.bf16 %v1854_v40, %v1853_v39  ;;  %v1856_v46 = vld [vmem:[%s3049_s0 + $0xd8] sm:$0x3f]  ;;  %v1863_v48 = vld [vmem:[%s3049_s0 + $0xf0] sm:$0xff] }
   0xc   :  { %2301 = vmatpush3.bf16.msra.mxu0 %v2300_v20  ;;  %2095 = vmatprep.mubr.msk.f32.mxu0 %vm2430_vm1, %v2431_v6  ;;  %v2335_v47 = vpack.c.bf16 %v1862_v43, %v1861_v42  ;;  %v1864_v49 = vld [vmem:[%s3049_s0 + $0xf8] sm:$0x3f]  ;;  %v2331_v50 = vpack.c.bf16 %v1856_v46, %v1855_v45  ;;  %v1869_v51 = vld [vmem:[%s3049_s0 + $0x100] sm:$0xff]  ;;  %v1870_v52 = vld [vmem:[%s3049_s0 + $0x108] sm:$0xff] }
   0xd   :  { %2085 = vmatmul.mubr.msk.f32.vlgmr.msra.gmra.mrb[0].mxu1 %vm19_vm4, %v2511_v19  ;;  %2302 = vmatprep.subr.bf16.mxu0 %v2429_v0  ;;  %v2338_v53 = vpack.c.bf16 %v1864_v49, %v1863_v48  ;;  %v1877_v54 = vld [vmem:[%s3049_s0 + $0x120] sm:$0xff]  ;;  %v1878_v55 = vld [vmem:[%s3049_s0 + $0x128] sm:$0xff]  ;;  %v2342_v56 = vpack.c.bf16 %v1870_v52, %v1869_v51  ;;  %v1871_v57 = vld [vmem:[%s3049_s0 + $0x110] sm:$0xff] }
   0xe   :  { %2308 = vmatpush3.bf16.msra.mxu1 %v2307_v23  ;;  %2106 = vmatprep.mubr.msk.f32.mxu1 %vm2430_vm1, %v2431_v6  ;;  %v1872_v58 = vld [vmem:[%s3049_s0 + $0x118] sm:$0x3f]  ;;  %v2349_v59 = vpack.c.bf16 %v1878_v55, %v1877_v54  ;;  %v1879_v60 = vld [vmem:[%s3049_s0 + $0x130] sm:$0xff]  ;;  %v1885_v63 = vld [vmem:[%s3049_s0 + $0x140] sm:$0xff] }
   0xf   :  { %2309 = vmatprep.subr.bf16.mxu1 %v2429_v0  ;;  %v1880_v61 = vld [vmem:[%s3049_s0 + $0x138] sm:$0x3f]  ;;  %v2345_v62 = vpack.c.bf16 %v1872_v58, %v1871_v57  ;;  %v1886_v1 = vld [vmem:[%s3049_s0 + $0x148] sm:$0xff]  ;;  %v1893_v3 = vld [vmem:[%s3049_s0 + $0x160] sm:$0xff] }
  0x10   :  { %2305 = vmatpush3.bf16.msk.msra.mxu0 %vm2489_vm3, %v2303_v26  ;;  %v2352_v2 = vpack.c.bf16 %v1880_v61, %v1879_v60  ;;  %v1894_v4 = vld [vmem:[%s3049_s0 + $0x168] sm:$0xff]  ;;  %v2356_v5 = vpack.c.bf16 %v1886_v1, %v1885_v63  ;;  %v1887_v7 = vld [vmem:[%s3049_s0 + $0x150] sm:$0xff]  ;;  %v1888_v8 = vld [vmem:[%s3049_s0 + $0x158] sm:$0x3f] }
  0x11   :  { %2313 = vmatprep.subr.bf16.mxu0 %v2429_v0  ;;  %v2363_v9 = vpack.c.bf16 %v1894_v4, %v1893_v3  ;;  %v1895_v10 = vld [vmem:[%s3049_s0 + $0x170] sm:$0xff]  ;;  %v1896_v11 = vld [vmem:[%s3049_s0 + $0x178] sm:$0x3f]  ;;  %v2359_v12 = vpack.c.bf16 %v1888_v8, %v1887_v7  ;;  %v1901_v14 = vld [vmem:[%s3049_s0 + $0x180] sm:$0xff] }
  0x12   :  { %2312 = vmatpush3.bf16.msk.msra.mxu1 %vm2489_vm3, %v2310_v29  ;;  %v1902_v15 = vld [vmem:[%s3049_s0 + $0x188] sm:$0xff]  ;;  %v2366_v16 = vpack.c.bf16 %v1896_v11, %v1895_v10  ;;  %v1909_v17 = vld [vmem:[%s3049_s0 + $0x1a0] sm:$0xff]  ;;  %v1903_v21 = vld [vmem:[%s3049_s0 + $0x190] sm:$0xff] }
  0x13   :  { %2096 = vmatmul.mubr.msk.f32.vlgmr.msra.gmra.mrb[2].mxu0 %vm19_vm4, %v2511_v19  ;;  %2320 = vmatprep.subr.bf16.mxu1 %v2429_v0  ;;  %v1910_v18 = vld [vmem:[%s3049_s0 + $0x1a8] sm:$0xff]  ;;  %v2370_v20 = vpack.c.bf16 %v1902_v15, %v1901_v14  ;;  %v1904_v22 = vld [vmem:[%s3049_s0 + $0x198] sm:$0x3f]  ;;  %v1911_v24 = vld [vmem:[%s3049_s0 + $0x1b0] sm:$0xff] }
  0x14   :  { %2315 = vmatpush3.bf16.msra.mxu0 %v2314_v32  ;;  %2117 = vmatprep.mubr.msk.f32.mxu0 %vm2430_vm1, %v2431_v6  ;;  %v2377_v23 = vpack.c.bf16 %v1910_v18, %v1909_v17  ;;  %v1912_v25 = vld [vmem:[%s3049_s0 + $0x1b8] sm:$0x3f]  ;;  %v2373_v26 = vpack.c.bf16 %v1904_v22, %v1903_v21  ;;  %v1917_v27 = vld [vmem:[%s3049_s0 + $0x1c0] sm:$0xff]  ;;  %v1918_v28 = vld [vmem:[%s3049_s0 + $0x1c8] sm:$0xff] }
  0x15   :  { %2107 = vmatmul.mubr.msk.f32.vlgmr.msra.gmra.mrb[2].mxu1 %vm19_vm4, %v2511_v19  ;;  %2316 = vmatprep.subr.bf16.mxu0 %v2429_v0  ;;  %v2380_v29 = vpack.c.bf16 %v1912_v25, %v1911_v24  ;;  %v1925_v30 = vld [vmem:[%s3049_s0 + $0x1e0] sm:$0xff]  ;;  %v1926_v31 = vld [vmem:[%s3049_s0 + $0x1e8] sm:$0xff]  ;;  %v2384_v32 = vpack.c.bf16 %v1918_v28, %v1917_v27  ;;  %v1919_v33 = vld [vmem:[%s3049_s0 + $0x1d0] sm:$0xff] }
  0x16   :  { %2322 = vmatpush3.bf16.msra.mxu1 %v2321_v35  ;;  %2128 = vmatprep.mubr.msk.f32.mxu1 %vm2430_vm1, %v2431_v6  ;;  %v1920_v34 = vld [vmem:[%s3049_s0 + $0x1d8] sm:$0x3f]  ;;  %v2391_v35 = vpack.c.bf16 %v1926_v31, %v1925_v30  ;;  %v1927_v36 = vld [vmem:[%s3049_s0 + $0x1f0] sm:$0xff]  ;;  %v1933_v39 = vld [vmem:[%s3049_s0 + $0x200] sm:$0xff] }
  0x17   :  { %2323 = vmatprep.subr.bf16.mxu1 %v2429_v0  ;;  %v1928_v37 = vld [vmem:[%s3049_s0 + $0x1f8] sm:$0x3f]  ;;  %v1934_v40 = vld [vmem:[%s3049_s0 + $0x208] sm:$0xff]  ;;  %v1941_v42 = vld [vmem:[%s3049_s0 + $0x220] sm:$0xff] }
  0x18   :  { %2319 = vmatpush3.bf16.msk.msra.mxu0 %vm2489_vm3, %v2317_v38  ;;  %v2387_v38 = vpack.c.bf16 %v1920_v34, %v1919_v33  ;;  %v1942_v43 = vld [vmem:[%s3049_s0 + $0x228] sm:$0xff]  ;;  %v1935_v45 = vld [vmem:[%s3049_s0 + $0x210] sm:$0xff]  ;;  %v1936_v46 = vld [vmem:[%s3049_s0 + $0x218] sm:$0x3f] }
  0x19   :  { %2327 = vmatprep.subr.bf16.mxu0 %v2429_v0  ;;  %v1943_v48 = vld [vmem:[%s3049_s0 + $0x230] sm:$0xff]  ;;  %v1944_v49 = vld [vmem:[%s3049_s0 + $0x238] sm:$0x3f]  ;;  %v1949_v51 = vld [vmem:[%s3049_s0 + $0x240] sm:$0xff] }
  0x1a   :  { %2326 = vmatpush3.bf16.msk.msra.mxu1 %vm2489_vm3, %v2324_v41  ;;  %v2394_v41 = vpack.c.bf16 %v1928_v37, %v1927_v36  ;;  %v1950_v52 = vld [vmem:[%s3049_s0 + $0x248] sm:$0xff]  ;;  %v1957_v54 = vld [vmem:[%s3049_s0 + $0x260] sm:$0xff]  ;;  %v1951_v57 = vld [vmem:[%s3049_s0 + $0x250] sm:$0xff] }
  0x1b   :  { %2118 = vmatmul.mubr.msk.f32.vlgmr.msra.gmra.mrb[4].mxu0 %vm19_vm4, %v2511_v19  ;;  %2334 = vmatprep.subr.bf16.mxu1 %v2429_v0  ;;  %v1958_v55 = vld [vmem:[%s3049_s0 + $0x268] sm:$0xff]  ;;  %v1952_v58 = vld [vmem:[%s3049_s0 + $0x258] sm:$0x3f]  ;;  %v1959_v60 = vld [vmem:[%s3049_s0 + $0x270] sm:$0xff] }
  0x1c   :  { %2329 = vmatpush3.bf16.msra.mxu0 %v2328_v44  ;;  %2139 = vmatprep.mubr.msk.f32.mxu0 %vm2430_vm1, %v2431_v6  ;;  %v2398_v44 = vpack.c.bf16 %v1934_v40, %v1933_v39  ;;  %v1960_v61 = vld [vmem:[%s3049_s0 + $0x278] sm:$0x3f] }
  0x1d   :  { %2129 = vmatmul.mubr.msk.f32.vlgmr.msra.gmra.mrb[4].mxu1 %vm19_vm4, %v2511_v19  ;;  %2330 = vmatprep.subr.bf16.mxu0 %v2429_v0  ;;  %v2422_v63 = vpack.c.bf16 %v1960_v61, %v1959_v60 }
  0x1e   :  { %2336 = vmatpush3.bf16.msra.mxu1 %v2335_v47  ;;  %2150 = vmatprep.mubr.msk.f32.mxu1 %vm2430_vm1, %v2431_v6  ;;  %v2405_v47 = vpack.c.bf16 %v1942_v43, %v1941_v42 }
  0x1f   :  { %2337 = vmatprep.subr.bf16.mxu1 %v2429_v0 }
  0x20   :  { %2333 = vmatpush3.bf16.msk.msra.mxu0 %vm2489_vm3, %v2331_v50  ;;  %v2401_v50 = vpack.c.bf16 %v1936_v46, %v1935_v45 }
  0x21   :  { %2341 = vmatprep.subr.bf16.mxu0 %v2429_v0 }
  0x22   :  { %2340 = vmatpush3.bf16.msk.msra.mxu1 %vm2489_vm3, %v2338_v53  ;;  %v2408_v53 = vpack.c.bf16 %v1944_v49, %v1943_v48 }
  0x23   :  { %2140 = vmatmul.mubr.msk.f32.vlgmr.msra.gmra.mrb[6].mxu0 %vm19_vm4, %v2511_v19  ;;  %2348 = vmatprep.subr.bf16.mxu1 %v2429_v0 }
  0x24   :  { %2343 = vmatpush3.bf16.msra.mxu0 %v2342_v56  ;;  %2161 = vmatprep.mubr.msk.f32.mxu0 %vm2430_vm1, %v2431_v6  ;;  %v2412_v56 = vpack.c.bf16 %v1950_v52, %v1949_v51 }
  0x25   :  { %2151 = vmatmul.mubr.msk.f32.vlgmr.msra.gmra.mrb[6].mxu1 %vm19_vm4, %v2511_v19  ;;  %2344 = vmatprep.subr.bf16.mxu0 %v2429_v0 }
  0x26   :  { %2350 = vmatpush3.bf16.msra.mxu1 %v2349_v59  ;;  %2172 = vmatprep.mubr.msk.f32.mxu1 %vm2430_vm1, %v2431_v6  ;;  %v2419_v59 = vpack.c.bf16 %v1958_v55, %v1957_v54 }
  0x27   :  { %2351 = vmatprep.subr.bf16.mxu1 %v2429_v0 }
  0x28   :  { %2347 = vmatpush3.bf16.msk.msra.mxu0 %vm2489_vm3, %v2345_v62  ;;  %v2415_v62 = vpack.c.bf16 %v1952_v58, %v1951_v57 }
  0x29   :  { %2355 = vmatprep.subr.bf16.mxu0 %v2429_v0 }
  0x2a   :  { %2354 = vmatpush3.bf16.msk.msra.mxu1 %vm2489_vm3, %v2352_v2 }
  0x2b   :  { %2162 = vmatmul.mubr.msk.f32.vlgmr.msra.gmra.mrb[8].mxu0 %vm19_vm4, %v2511_v19  ;;  %2362 = vmatprep.subr.bf16.mxu1 %v2429_v0 }
  0x2c   :  { %2357 = vmatpush3.bf16.msra.mxu0 %v2356_v5  ;;  %2183 = vmatprep.mubr.msk.f32.mxu0 %vm2430_vm1, %v2431_v6 }
  0x2d   :  { %2173 = vmatmul.mubr.msk.f32.vlgmr.msra.gmra.mrb[8].mxu1 %vm19_vm4, %v2511_v19  ;;  %2358 = vmatprep.subr.bf16.mxu0 %v2429_v0 }
  0x2e   :  { %2364 = vmatpush3.bf16.msra.mxu1 %v2363_v9  ;;  %2194 = vmatprep.mubr.msk.f32.mxu1 %vm2430_vm1, %v2431_v6 }
  0x2f   :  { %2365 = vmatprep.subr.bf16.mxu1 %v2429_v0 }
  0x30   :  { %2361 = vmatpush3.bf16.msk.msra.mxu0 %vm2489_vm3, %v2359_v12 }
  0x31   :  { %2369 = vmatprep.subr.bf16.mxu0 %v2429_v0 }
  0x32   :  { %2368 = vmatpush3.bf16.msk.msra.mxu1 %vm2489_vm3, %v2366_v16 }
  0x33   :  { %2184 = vmatmul.mubr.msk.f32.vlgmr.msra.gmra.mrb[10].mxu0 %vm19_vm4, %v2511_v19  ;;  %2376 = vmatprep.subr.bf16.mxu1 %v2429_v0 }
  0x34   :  { %2371 = vmatpush3.bf16.msra.mxu0 %v2370_v20  ;;  %2205 = vmatprep.mubr.msk.f32.mxu0 %vm2430_vm1, %v2431_v6 }
  0x35   :  { %2195 = vmatmul.mubr.msk.f32.vlgmr.msra.gmra.mrb[10].mxu1 %vm19_vm4, %v2511_v19  ;;  %2372 = vmatprep.subr.bf16.mxu0 %v2429_v0 }
  0x36   :  { %2378 = vmatpush3.bf16.msra.mxu1 %v2377_v23  ;;  %2216 = vmatprep.mubr.msk.f32.mxu1 %vm2430_vm1, %v2431_v6 }
  0x37   :  { %2379 = vmatprep.subr.bf16.mxu1 %v2429_v0 }
  0x38   :  { %2375 = vmatpush3.bf16.msk.msra.mxu0 %vm2489_vm3, %v2373_v26 }
  0x39   :  { %2383 = vmatprep.subr.bf16.mxu0 %v2429_v0 }
  0x3a   :  { %2382 = vmatpush3.bf16.msk.msra.mxu1 %vm2489_vm3, %v2380_v29 }
  0x3b   :  { %2206 = vmatmul.mubr.msk.f32.vlgmr.msra.gmra.mrb[12].mxu0 %vm19_vm4, %v2511_v19  ;;  %2390 = vmatprep.subr.bf16.mxu1 %v2429_v0 }
  0x3c   :  { %2385 = vmatpush3.bf16.msra.mxu0 %v2384_v32  ;;  %2227 = vmatprep.mubr.msk.f32.mxu0 %vm2430_vm1, %v2431_v6 }
  0x3d   :  { %2217 = vmatmul.mubr.msk.f32.vlgmr.msra.gmra.mrb[12].mxu1 %vm19_vm4, %v2511_v19  ;;  %2386 = vmatprep.subr.bf16.mxu0 %v2429_v0 }
  0x3e   :  { %2392 = vmatpush3.bf16.msra.mxu1 %v2391_v35  ;;  %2238 = vmatprep.mubr.msk.f32.mxu1 %vm2430_vm1, %v2431_v6 }
  0x3f   :  { %2393 = vmatprep.subr.bf16.mxu1 %v2429_v0 }
  0x40   :  { %2389 = vmatpush3.bf16.msk.msra.mxu0 %vm2489_vm3, %v2387_v38 }
  0x41   :  { %2397 = vmatprep.subr.bf16.mxu0 %v2429_v0 }
  0x42   :  { %2396 = vmatpush3.bf16.msk.msra.mxu1 %vm2489_vm3, %v2394_v41 }
  0x43   :  { %2228 = vmatmul.mubr.msk.f32.vlgmr.msra.gmra.mrb[14].mxu0 %vm19_vm4, %v2511_v19  ;;  %2404 = vmatprep.subr.bf16.mxu1 %v2429_v0 }
  0x44   :  { %2399 = vmatpush3.bf16.msra.mxu0 %v2398_v44  ;;  %2249 = vmatprep.mubr.msk.f32.mxu0 %vm2430_vm1, %v2431_v6 }
  0x45   :  { %2239 = vmatmul.mubr.msk.f32.vlgmr.msra.gmra.mrb[14].mxu1 %vm19_vm4, %v2511_v19  ;;  %2400 = vmatprep.subr.bf16.mxu0 %v2429_v0 }
  0x46   :  { %2406 = vmatpush3.bf16.msra.mxu1 %v2405_v47  ;;  %2260 = vmatprep.mubr.msk.f32.mxu1 %vm2430_vm1, %v2431_v6 }
  0x47   :  { %2407 = vmatprep.subr.bf16.mxu1 %v2429_v0 }
  0x48   :  { %2403 = vmatpush3.bf16.msk.msra.mxu0 %vm2489_vm3, %v2401_v50 }
  0x49   :  { %2411 = vmatprep.subr.bf16.mxu0 %v2429_v0 }
  0x4a   :  { %2410 = vmatpush3.bf16.msk.msra.mxu1 %vm2489_vm3, %v2408_v53 }
  0x4b   :  { %2250 = vmatmul.mubr.msk.f32.vlgmr.msra.gmra.mrb[16].mxu0 %vm19_vm4, %v2511_v19  ;;  %2418 = vmatprep.subr.bf16.mxu1 %v2429_v0 }
  0x4c   :  { %2413 = vmatpush3.bf16.msra.mxu0 %v2412_v56  ;;  %2271 = vmatprep.mubr.msk.f32.mxu0 %vm2430_vm1, %v2431_v6 }
  0x4d   :  { %2261 = vmatmul.mubr.msk.f32.vlgmr.msra.gmra.mrb[16].mxu1 %vm19_vm4, %v2511_v19  ;;  %2414 = vmatprep.subr.bf16.mxu0 %v2429_v0 }
  0x4e   :  { %2420 = vmatpush3.bf16.msra.mxu1 %v2419_v59  ;;  %2282 = vmatprep.mubr.msk.f32.mxu1 %vm2430_vm1, %v2431_v6 }
  0x4f   :  { %2421 = vmatprep.subr.bf16.mxu1 %v2429_v0 }
  0x50   :  { %2417 = vmatpush3.bf16.msk.msra.mxu0 %vm2489_vm3, %v2415_v62 }
  0x52   :  { %2424 = vmatpush3.bf16.msk.msra.mxu1 %vm2489_vm3, %v2422_v63 }
  0x53   :  { %2272 = vmatmul.mubr.msk.f32.vlgmr.msra.gmra.mrb[18].mxu0 %vm19_vm4, %v2511_v19 }
  0x55   :  { %2283 = vmatmul.mubr.msk.f32.vlgmr.msra.gmra.mrb[18].mxu1 %vm19_vm4, %v2511_v19 }
  0xde   :  { %v93_v1 = vpop.f32.mrb[0].mxu0 }
  0xdf   :  { %v1811_v2 = vadd.f32 -0.3, %v93_v1  ;;  %102 = vst [vmem:[%s3051_s3] sm:$0x3] %v93_v1  ;;  %v2075_v3 = vpop.f32.mrb[1].mxu0  ;;  %v182_v13 = vmul.f32 0.3, %v93_v1 }
  0xe0   :  { %v178_v0 = vpop.f32.mrb[0].mxu1 }
  0xe1   :  { %vm98_vm5 = vcmp.gt.f32.partialorder %v1811_v2, 0.0  ;;  %v2086_v4 = vpop.f32.mrb[1].mxu1 }
  0xe2   :  { %v1812_v5 = vsel %vm98_vm5, 1.0, %v2431_v6 }
  0xe3   :  { %103 = vst [vmem:[%s3052_s4] sm:$0x3] %v1812_v5  ;;  %v183_v7 = vsub.f32 1.0, %v1812_v5 }
  0xe5   :  { %v184_v8 = vmul.f32 %v183_v7, %v182_v13 }
  0xe6   :  { %v267_v19 = vpop.f32.mrb[2].mxu0 }
  0xe7   :  { %v185_v9 = vadd.f32 %v184_v8, %v178_v0  ;;  %v2097_v10 = vpop.f32.mrb[3].mxu0 }
  0xe8   :  { %v356_v11 = vpop.f32.mrb[2].mxu1 }
  0xe9   :  { %v1819_v12 = vadd.f32 -0.3, %v185_v9  ;;  %191 = vst [vmem:[%s3051_s3 + $0x2] sm:$0x3] %v185_v9  ;;  %v2108_v14 = vpop.f32.mrb[3].mxu1 }
  0xea   :  { %v271_v17 = vmul.f32 0.3, %v185_v9 }
  0xeb   :  { %vm187_vm6 = vcmp.gt.f32.partialorder %v1819_v12, 0.0 }
  0xec   :  { %v1820_v15 = vsel %vm187_vm6, 1.0, %v2431_v6 }
  0xed   :  { %v190_v16 = vadd.f32 %v1820_v15, %v1812_v5  ;;  %192 = vst [vmem:[%s3052_s4 + $0x2] sm:$0x3] %v1820_v15  ;;  %v272_v18 = vsub.f32 1.0, %v1820_v15 }
  0xee   :  { %v445_v20 = vpop.f32.mrb[4].mxu0 }
  0xef   :  { %v273_v21 = vmul.f32 %v272_v18, %v271_v17  ;;  %v2119_v22 = vpop.f32.mrb[5].mxu0 }
  0xf0   :  { %v534_v23 = vpop.f32.mrb[4].mxu1 }
  0xf1   :  { %v274_v24 = vadd.f32 %v273_v21, %v267_v19  ;;  %v2130_v25 = vpop.f32.mrb[5].mxu1 }
  0xf3   :  { %v1827_v26 = vadd.f32 -0.3, %v274_v24  ;;  %280 = vst [vmem:[%s3051_s3 + $0x4] sm:$0x3] %v274_v24  ;;  %v360_v30 = vmul.f32 0.3, %v274_v24 }
  0xf5   :  { %vm276_vm7 = vcmp.gt.f32.partialorder %v1827_v26, 0.0 }
  0xf6   :  { %v1828_v27 = vsel %vm276_vm7, 1.0, %v2431_v6  ;;  %v623_v28 = vpop.f32.mrb[6].mxu0 }
  0xf7   :  { %v279_v29 = vadd.f32 %v1828_v27, %v190_v16  ;;  %281 = vst [vmem:[%s3052_s4 + $0x4] sm:$0x3] %v1828_v27  ;;  %v361_v31 = vsub.f32 1.0, %v1828_v27  ;;  %v2141_v32 = vpop.f32.mrb[7].mxu0 }
  0xf8   :  { %v2888_v33 = vpop.f32.mrb[6].mxu1 }
  0xf9   :  { %v362_v34 = vmul.f32 %v361_v31, %v360_v30  ;;  %v2152_v35 = vpop.f32.mrb[7].mxu1 }
  0xfb   :  { %v363_v36 = vadd.f32 %v362_v34, %v356_v11 }
  0xfd   :  { %v1835_v37 = vadd.f32 -0.3, %v363_v36  ;;  %369 = vst [vmem:[%s3051_s3 + $0x6] sm:$0x3] %v363_v36  ;;  %v449_v43 = vmul.f32 0.3, %v363_v36 }
  0xfe   :  { %v2893_v38 = vpop.f32.mrb[8].mxu0 }
  0xff   :  { %vm365_vm8 = vcmp.gt.f32.partialorder %v1835_v37, 0.0  ;;  %v2163_v39 = vpop.f32.mrb[9].mxu0 }
 0x100   :  { %v1836_v40 = vsel %vm365_vm8, 1.0, %v2431_v6  ;;  %v2896_v41 = vpop.f32.mrb[8].mxu1 }
 0x101   :  { %v368_v42 = vadd.f32 %v1836_v40, %v279_v29  ;;  %370 = vst [vmem:[%s3052_s4 + $0x6] sm:$0x3] %v1836_v40  ;;  %v450_v44 = vsub.f32 1.0, %v1836_v40  ;;  %v2174_v45 = vpop.f32.mrb[9].mxu1 }
 0x103   :  { %v451_v46 = vmul.f32 %v450_v44, %v449_v43 }
 0x105   :  { %v452_v47 = vadd.f32 %v451_v46, %v445_v20 }
 0x106   :  { %v2901_v48 = vpop.f32.mrb[10].mxu0 }
 0x107   :  { %v1843_v49 = vadd.f32 -0.3, %v452_v47  ;;  %458 = vst [vmem:[%s3051_s3 + $0x8] sm:$0x3] %v452_v47  ;;  %v2185_v50 = vpop.f32.mrb[11].mxu0 }
 0x108   :  { %v2906_v51 = vpop.f32.mrb[10].mxu1  ;;  %v538_v55 = vmul.f32 0.3, %v452_v47 }
 0x109   :  { %vm454_vm9 = vcmp.gt.f32.partialorder %v1843_v49, 0.0  ;;  %v2196_v52 = vpop.f32.mrb[11].mxu1 }
 0x10a   :  { %v1844_v53 = vsel %vm454_vm9, 1.0, %v2431_v6 }
 0x10b   :  { %v457_v54 = vadd.f32 %v1844_v53, %v368_v42  ;;  %459 = vst [vmem:[%s3052_s4 + $0x8] sm:$0x3] %v1844_v53  ;;  %v539_v56 = vsub.f32 1.0, %v1844_v53 }
 0x10d   :  { %v540_v57 = vmul.f32 %v539_v56, %v538_v55 }
 0x10e   :  { %v2912_v58 = vpop.f32.mrb[12].mxu0 }
 0x10f   :  { %v541_v59 = vadd.f32 %v540_v57, %v534_v23  ;;  %v2207_v60 = vpop.f32.mrb[13].mxu0 }
 0x110   :  { %v2914_v61 = vpop.f32.mrb[12].mxu1 }
 0x111   :  { %v1851_v62 = vadd.f32 -0.3, %v541_v59  ;;  %547 = vst [vmem:[%s3051_s3 + $0xa] sm:$0x3] %v541_v59  ;;  %v2218_v63 = vpop.f32.mrb[13].mxu1 }
 0x112   :  { %v627_v3 = vmul.f32 0.3, %v541_v59 }
 0x113   :  { %vm543_vm10 = vcmp.gt.f32.partialorder %v1851_v62, 0.0 }
 0x114   :  { %v1852_v1 = vsel %vm543_vm10, 1.0, %v2431_v6 }
 0x115   :  { %v546_v2 = vadd.f32 %v1852_v1, %v457_v54  ;;  %548 = vst [vmem:[%s3052_s4 + $0xa] sm:$0x3] %v1852_v1  ;;  %v628_v0 = vsub.f32 1.0, %v1852_v1 }
 0x116   :  { %v2923_v4 = vpop.f32.mrb[14].mxu0 }
 0x117   :  { %v629_v5 = vmul.f32 %v628_v0, %v627_v3  ;;  %v2229_v13 = vpop.f32.mrb[15].mxu0 }
 0x118   :  { %v2925_v7 = vpop.f32.mrb[14].mxu1 }
 0x119   :  { %v630_v8 = vadd.f32 %v629_v5, %v623_v28  ;;  %v2240_v19 = vpop.f32.mrb[15].mxu1 }
 0x11b   :  { %v1859_v9 = vadd.f32 -0.3, %v630_v8  ;;  %636 = vst [vmem:[%s3051_s3 + $0xc] sm:$0x3] %v630_v8  ;;  %v716_v14 = vmul.f32 0.3, %v630_v8 }
 0x11d   :  { %vm632_vm11 = vcmp.gt.f32.partialorder %v1859_v9, 0.0 }
 0x11e   :  { %v1860_v10 = vsel %vm632_vm11, 1.0, %v2431_v6  ;;  %v2931_v11 = vpop.f32.mrb[16].mxu0 }
 0x11f   :  { %v635_v12 = vadd.f32 %v1860_v10, %v546_v2  ;;  %637 = vst [vmem:[%s3052_s4 + $0xc] sm:$0x3] %v1860_v10  ;;  %v717_v15 = vsub.f32 1.0, %v1860_v10  ;;  %v2251_v16 = vpop.f32.mrb[17].mxu0 }
 0x120   :  { %v2936_v17 = vpop.f32.mrb[16].mxu1 }
 0x121   :  { %v718_v18 = vmul.f32 %v717_v15, %v716_v14  ;;  %v2262_v20 = vpop.f32.mrb[17].mxu1 }
 0x123   :  { %v719_v21 = vadd.f32 %v718_v18, %v2888_v33 }
 0x125   :  { %v1867_v22 = vadd.f32 -0.3, %v719_v21  ;;  %725 = vst [vmem:[%s3051_s3 + $0xe] sm:$0x3] %v719_v21  ;;  %v805_v28 = vmul.f32 0.3, %v719_v21 }
 0x126   :  { %v2942_v23 = vpop.f32.mrb[18].mxu0 }
 0x127   :  { %vm721_vm12 = vcmp.gt.f32.partialorder %v1867_v22, 0.0  ;;  %v2273_v24 = vpop.f32.mrb[19].mxu0 }
 0x128   :  { %v1868_v25 = vsel %vm721_vm12, 1.0, %v2431_v6  ;;  %v2945_v26 = vpop.f32.mrb[18].mxu1 }
 0x129   :  { %v724_v27 = vadd.f32 %v1868_v25, %v635_v12  ;;  %726 = vst [vmem:[%s3052_s4 + $0xe] sm:$0x3] %v1868_v25  ;;  %v806_v29 = vsub.f32 1.0, %v1868_v25  ;;  %v2284_v30 = vpop.f32.mrb[19].mxu1 }
 0x12b   :  { %v807_v31 = vmul.f32 %v806_v29, %v805_v28 }
 0x12d   :  { %v808_v32 = vadd.f32 %v807_v31, %v2893_v38 }
 0x12f   :  { %v1875_v33 = vadd.f32 -0.3, %v808_v32  ;;  %814 = vst [vmem:[%s3051_s3 + $0x10] sm:$0x3] %v808_v32  ;;  %v894_v36 = vmul.f32 0.3, %v808_v32 }
 0x131   :  { %vm810_vm13 = vcmp.gt.f32.partialorder %v1875_v33, 0.0 }
 0x132   :  { %v1876_v34 = vsel %vm810_vm13, 1.0, %v2431_v6 }
 0x133   :  { %v813_v35 = vadd.f32 %v1876_v34, %v724_v27  ;;  %815 = vst [vmem:[%s3052_s4 + $0x10] sm:$0x3] %v1876_v34  ;;  %v895_v37 = vsub.f32 1.0, %v1876_v34 }
 0x135   :  { %v896_v39 = vmul.f32 %v895_v37, %v894_v36 }
 0x137   :  { %v897_v40 = vadd.f32 %v896_v39, %v2896_v41 }
 0x139   :  { %v1883_v42 = vadd.f32 -0.3, %v897_v40  ;;  %903 = vst [vmem:[%s3051_s3 + $0x12] sm:$0x3] %v897_v40  ;;  %v983_v44 = vmul.f32 0.3, %v897_v40 }
 0x13b   :  { %vm899_vm14 = vcmp.gt.f32.partialorder %v1883_v42, 0.0 }
 0x13c   :  { %v1884_v38 = vsel %vm899_vm14, 1.0, %v2431_v6 }
 0x13d   :  { %v902_v43 = vadd.f32 %v1884_v38, %v813_v35  ;;  %904 = vst [vmem:[%s3052_s4 + $0x12] sm:$0x3] %v1884_v38  ;;  %v984_v45 = vsub.f32 1.0, %v1884_v38 }
 0x13f   :  { %v985_v46 = vmul.f32 %v984_v45, %v983_v44 }
 0x141   :  { %v986_v47 = vadd.f32 %v985_v46, %v2901_v48 }
 0x143   :  { %v1891_v49 = vadd.f32 -0.3, %v986_v47  ;;  %992 = vst [vmem:[%s3051_s3 + $0x14] sm:$0x3] %v986_v47  ;;  %v1072_v52 = vmul.f32 0.3, %v986_v47 }
 0x145   :  { %vm988_vm15 = vcmp.gt.f32.partialorder %v1891_v49, 0.0 }
 0x146   :  { %v1892_v41 = vsel %vm988_vm15, 1.0, %v2431_v6 }
 0x147   :  { %v991_v50 = vadd.f32 %v1892_v41, %v902_v43  ;;  %993 = vst [vmem:[%s3052_s4 + $0x14] sm:$0x3] %v1892_v41  ;;  %v1073_v53 = vsub.f32 1.0, %v1892_v41 }
 0x149   :  { %v1074_v54 = vmul.f32 %v1073_v53, %v1072_v52 }
 0x14b   :  { %v1075_v55 = vadd.f32 %v1074_v54, %v2906_v51 }
 0x14d   :  { %v1899_v56 = vadd.f32 -0.3, %v1075_v55  ;;  %1081 = vst [vmem:[%s3051_s3 + $0x16] sm:$0x3] %v1075_v55  ;;  %v1161_v59 = vmul.f32 0.3, %v1075_v55 }
 0x14f   :  { %vm1077_vm0 = vcmp.gt.f32.partialorder %v1899_v56, 0.0 }
 0x150   :  { %v1900_v48 = vsel %vm1077_vm0, 1.0, %v2431_v6 }
 0x151   :  { %v1080_v57 = vadd.f32 %v1900_v48, %v991_v50  ;;  %1082 = vst [vmem:[%s3052_s4 + $0x16] sm:$0x3] %v1900_v48  ;;  %v1162_v60 = vsub.f32 1.0, %v1900_v48 }
 0x153   :  { %v1163_v62 = vmul.f32 %v1162_v60, %v1161_v59 }
 0x155   :  { %v1164_v63 = vadd.f32 %v1163_v62, %v2912_v58 }
 0x157   :  { %v1907_v1 = vadd.f32 -0.3, %v1164_v63  ;;  %1170 = vst [vmem:[%s3051_s3 + $0x18] sm:$0x3] %v1164_v63  ;;  %v1250_v3 = vmul.f32 0.3, %v1164_v63 }
 0x159   :  { %vm1166_vm1 = vcmp.gt.f32.partialorder %v1907_v1, 0.0 }
 0x15a   :  { %v1908_v51 = vsel %vm1166_vm1, 1.0, %v2431_v6 }
 0x15b   :  { %v1169_v2 = vadd.f32 %v1908_v51, %v1080_v57  ;;  %1171 = vst [vmem:[%s3052_s4 + $0x18] sm:$0x3] %v1908_v51  ;;  %v1251_v0 = vsub.f32 1.0, %v1908_v51 }
 0x15d   :  { %v1252_v5 = vmul.f32 %v1251_v0, %v1250_v3 }
 0x15f   :  { %v1253_v13 = vadd.f32 %v1252_v5, %v2914_v61 }
 0x161   :  { %v1915_v8 = vadd.f32 -0.3, %v1253_v13  ;;  %1259 = vst [vmem:[%s3051_s3 + $0x1a] sm:$0x3] %v1253_v13  ;;  %v1339_v9 = vmul.f32 0.3, %v1253_v13 }
 0x163   :  { %vm1255_vm2 = vcmp.gt.f32.partialorder %v1915_v8, 0.0 }
 0x164   :  { %v1916_v58 = vsel %vm1255_vm2, 1.0, %v2431_v6 }
 0x165   :  { %v1258_v19 = vadd.f32 %v1916_v58, %v1169_v2  ;;  %1260 = vst [vmem:[%s3052_s4 + $0x1a] sm:$0x3] %v1916_v58  ;;  %v1340_v10 = vsub.f32 1.0, %v1916_v58 }
 0x167   :  { %v1341_v12 = vmul.f32 %v1340_v10, %v1339_v9 }
 0x169   :  { %v1342_v14 = vadd.f32 %v1341_v12, %v2923_v4 }
 0x16b   :  { %v1923_v15 = vadd.f32 -0.3, %v1342_v14  ;;  %1348 = vst [vmem:[%s3051_s3 + $0x1c] sm:$0x3] %v1342_v14  ;;  %v1428_v18 = vmul.f32 0.3, %v1342_v14 }
 0x16d   :  { %vm1344_vm3 = vcmp.gt.f32.partialorder %v1923_v15, 0.0 }
 0x16e   :  { %v1924_v61 = vsel %vm1344_vm3, 1.0, %v2431_v6 }
 0x16f   :  { %v1347_v16 = vadd.f32 %v1924_v61, %v1258_v19  ;;  %1349 = vst [vmem:[%s3052_s4 + $0x1c] sm:$0x3] %v1924_v61  ;;  %v1429_v20 = vsub.f32 1.0, %v1924_v61 }
 0x171   :  { %v1430_v21 = vmul.f32 %v1429_v20, %v1428_v18 }
 0x173   :  { %v1431_v22 = vadd.f32 %v1430_v21, %v2925_v7 }
 0x175   :  { %v1931_v24 = vadd.f32 -0.3, %v1431_v22  ;;  %1437 = vst [vmem:[%s3051_s3 + $0x1e] sm:$0x3] %v1431_v22  ;;  %v1517_v27 = vmul.f32 0.3, %v1431_v22 }
 0x177   :  { %vm1433_vm4 = vcmp.gt.f32.partialorder %v1931_v24, 0.0 }
 0x178   :  { %v1932_v4 = vsel %vm1433_vm4, 1.0, %v2431_v6 }
 0x179   :  { %v1436_v25 = vadd.f32 %v1932_v4, %v1347_v16  ;;  %1438 = vst [vmem:[%s3052_s4 + $0x1e] sm:$0x3] %v1932_v4  ;;  %v1518_v28 = vsub.f32 1.0, %v1932_v4 }
 0x17b   :  { %v1519_v29 = vmul.f32 %v1518_v28, %v1517_v27 }
 0x17d   :  { %v1520_v30 = vadd.f32 %v1519_v29, %v2931_v11 }
 0x17f   :  { %v1939_v31 = vadd.f32 -0.3, %v1520_v30  ;;  %1526 = vst [vmem:[%s3051_s3 + $0x20] sm:$0x3] %v1520_v30  ;;  %v1606_v33 = vmul.f32 0.3, %v1520_v30 }
 0x181   :  { %vm1522_vm5 = vcmp.gt.f32.partialorder %v1939_v31, 0.0 }
 0x182   :  { %v1940_v7 = vsel %vm1522_vm5, 1.0, %v2431_v6 }
 0x183   :  { %v1525_v32 = vadd.f32 %v1940_v7, %v1436_v25  ;;  %1527 = vst [vmem:[%s3052_s4 + $0x20] sm:$0x3] %v1940_v7  ;;  %v1607_v34 = vsub.f32 1.0, %v1940_v7 }
 0x185   :  { %v1608_v35 = vmul.f32 %v1607_v34, %v1606_v33 }
 0x187   :  { %v1609_v36 = vadd.f32 %v1608_v35, %v2936_v17 }
 0x189   :  { %v1947_v37 = vadd.f32 -0.3, %v1609_v36  ;;  %1615 = vst [vmem:[%s3051_s3 + $0x22] sm:$0x3] %v1609_v36  ;;  %v1695_v40 = vmul.f32 0.3, %v1609_v36 }
 0x18b   :  { %vm1611_vm6 = vcmp.gt.f32.partialorder %v1947_v37, 0.0 }
 0x18c   :  { %v1948_v11 = vsel %vm1611_vm6, 1.0, %v2431_v6 }
 0x18d   :  { %v1614_v39 = vadd.f32 %v1948_v11, %v1525_v32  ;;  %1616 = vst [vmem:[%s3052_s4 + $0x22] sm:$0x3] %v1948_v11  ;;  %v1696_v42 = vsub.f32 1.0, %v1948_v11 }
 0x18f   :  { %v1697_v38 = vmul.f32 %v1696_v42, %v1695_v40 }
 0x191   :  { %v1698_v43 = vadd.f32 %v1697_v38, %v2942_v23 }
 0x193   :  { %v1955_v44 = vadd.f32 -0.3, %v1698_v43  ;;  %1704 = vst [vmem:[%s3051_s3 + $0x24] sm:$0x3] %v1698_v43  ;;  %v1784_v46 = vmul.f32 0.3, %v1698_v43 }
 0x195   :  { %vm1700_vm7 = vcmp.gt.f32.partialorder %v1955_v44, 0.0 }
 0x196   :  { %v1956_v17 = vsel %vm1700_vm7, 1.0, %v2431_v6 }
 0x197   :  { %1705 = vst [vmem:[%s3052_s4 + $0x24] sm:$0x3] %v1956_v17  ;;  %v1703_v45 = vadd.f32 %v1956_v17, %v1614_v39  ;;  %v1785_v47 = vsub.f32 1.0, %v1956_v17 }
 0x199   :  { %v1786_v49 = vmul.f32 %v1785_v47, %v1784_v46 }
 0x19b   :  { %v1787_v41 = vadd.f32 %v1786_v49, %v2945_v26 }
 0x19d   :  { %v1963_v50 = vadd.f32 -0.3, %v1787_v41  ;;  %1793 = vst [vmem:[%s3051_s3 + $0x26] sm:$0x3] %v1787_v41 }
 0x19f   :  { %vm1789_vm8 = vcmp.gt.f32.partialorder %v1963_v50, 0.0 }
 0x1a0   :  { %v1964_v23 = vsel %vm1789_vm8, 1.0, %v2431_v6 }
 0x1a1   :  { %v1792_v52 = vadd.f32 %v1964_v23, %v1703_v45  ;;  %1794 = vst [vmem:[%s3052_s4 + $0x26] sm:$0x3] %v1964_v23 }
 0x1a3   :  { %v1795_v53 = vmul.f32 0.05, %v1792_v52 }
 0x1a5   :  { %1796 = vst [vmem:[%s3053_s2] sm:$0x3] %v1795_v53 }

</bundles_post_ra>
